<compile_context>
chip_gen: v7x
topology: tpu7x:2x2x1
jax: 0.10.0
libtpu: 0.0.40
codegen_flags: <defaults>
</compile_context>

<pallas_src>
import functools

import jax
import jax.numpy as jnp
import numpy as np
from jax import lax
from jax.experimental import pallas as pl
from jax.experimental.pallas import tpu as pltpu


def _grid_self_attn_kernel(xq_ref, xkv_ref, bias_ref, nb_ref,
                           qw_ref, kw_ref, vw_ref, gw_ref, ow_ref,
                           o_ref, wv_ref, *, num_head, key_dim, value_dim):
    """One (query-tile, batch) grid step. All matmuls bf16 in / f32 accumulate."""
    f32 = jnp.float32
    bf16 = jnp.bfloat16
    H, Kd, Vd = num_head, key_dim, value_dim

    xq = xq_ref[0]                     # (Tq, A)  bf16  -- query rows of this tile
    xkv = xkv_ref[0]                   # (S,  A)  bf16  -- full sequence (keys / values)
    bias = bias_ref[0].astype(f32)     # (Tq, S)  upcast once; adds stay in f32

    # Head-fused slab projections: full 128-lane MXU output width (N = H*Kd / H*Vd).
    q_all = jnp.dot(xq, qw_ref[...], preferred_element_type=f32).astype(bf16)    # (Tq, H*Kd)
    k_all = jnp.dot(xkv, kw_ref[...], preferred_element_type=f32).astype(bf16)   # (S,  H*Kd)
    v_all = jnp.dot(xkv, vw_ref[...], preferred_element_type=f32).astype(bf16)   # (S,  H*Vd)
    gate = jax.nn.sigmoid(
        jnp.dot(xq, gw_ref[...], preferred_element_type=f32))                    # (Tq, H*Vd) f32

    for h in range(H):  # static unroll; H is small
        qh = q_all[:, h * Kd:(h + 1) * Kd]   # (Tq, Kd) bf16 -- static lane slice
        kh = k_all[:, h * Kd:(h + 1) * Kd]   # (S,  Kd) bf16
        vh = v_all[:, h * Vd:(h + 1) * Vd]   # (S,  Vd) bf16

        # q @ k^T without materializing a transpose: contract last dims of both operands.
        logits = lax.dot_general(
            qh, kh, (((1,), (1,)), ((), ())),
            preferred_element_type=f32)                                           # (Tq, S) f32
        logits = logits + bias + nb_ref[h].astype(f32)

        # Softmax: f32 statistics, bf16 probability slab, EUP approx reciprocal.
        m = jnp.max(logits, axis=-1, keepdims=True)
        p = jnp.exp(logits - m)                                                   # (Tq, S) f32
        inv = pl.reciprocal(jnp.sum(p, axis=-1, keepdims=True), approx=True)      # (Tq, 1)
        p16 = p.astype(bf16)

        # Un-normalized probabilities hit the MXU; normalize the small (Tq, Vd) result.
        wv_h = jnp.dot(p16, vh, preferred_element_type=f32) * inv                 # (Tq, Vd) f32
        wv_ref[:, h * Vd:(h + 1) * Vd] = wv_h   # static lane-offset write into scratch

    # Fused output projection across heads: one matmul with K = H*Vd, lane-dense N = O_pad.
    gated = (wv_ref[...] * gate).astype(bf16)                                     # (Tq, H*Vd)
    o_ref[0] = jnp.dot(gated, ow_ref[...], preferred_element_type=f32)            # (Tq, O_pad)


def _tpu_tuning():
    """(query-tile target, vmem_limit_bytes); conservative on v7x / unknown parts."""
    try:
        kind = jax.devices()[0].device_kind.lower()
    except Exception:  # pragma: no cover - defensive
        kind = ""
    if any(t in kind for t in ("v5 lite", "v5e", "v5litepod", "v6")):
        return 512, 100 * 1024 * 1024      # 128 MiB physical VMEM parts
    return 256, 56 * 1024 * 1024           # v7x (64 MiB VMEM) / unknown: leave headroom


def _pick_q_tile(S, target):
    if S <= target:
        return S                           # full-extent block is always legal
    for t in range(target, 15, -1):        # 16-aligned for bf16 sublane packing
        if S % t == 0 and t % 16 == 0:
            return t
    # TODO(synk): pad S to a multiple of a clean tile instead of a full-extent block.
    return S


def grid_self_attention(q_data, bias, nonbatched_bias,
                        query_w, key_w, value_w, gating_w, output_w,
                        *, q_tile=None):
    """JAX wrapper: packs/casts weights and launches the Pallas kernel."""
    q_data = jnp.asarray(q_data)
    B, S, A = q_data.shape
    query_w = jnp.asarray(query_w)
    key_w = jnp.asarray(key_w)
    value_w = jnp.asarray(value_w)
    gating_w = jnp.asarray(gating_w)
    output_w = jnp.asarray(output_w)

    M = key_w.shape[0]
    H, Kd = query_w.shape[1], query_w.shape[2]
    Vd = value_w.shape[2]
    O = output_w.shape[2]

    target, vmem_limit = _tpu_tuning()
    if q_tile is None:
        q_tile = _pick_q_tile(S, target)
    assert S % q_tile == 0, "S must be divisible by the query tile"

    # Lane-dense output: pad O up to a multiple of 128 (unmasked stores), slice after.
    O_pad = ((O + 127) // 128) * 128

    x_bf16 = q_data.astype(jnp.bfloat16)
    # bias / nonbatched_bias DMA'd as bf16 (upcast + added in f32 inside the kernel).
    bias_bf16 = jnp.asarray(bias).astype(jnp.bfloat16)
    nb_bf16 = jnp.asarray(nonbatched_bias).astype(jnp.bfloat16)

    scale = float(Kd) ** -0.5
    # Head-fused weight slabs; q scale folded into query_w once on the host side.
    qw_slab = (query_w.astype(jnp.float32) * scale).reshape(A, H * Kd).astype(jnp.bfloat16)
    kw_slab = key_w.reshape(M, H * Kd).astype(jnp.bfloat16)
    vw_slab = value_w.reshape(M, H * Vd).astype(jnp.bfloat16)
    gw_slab = gating_w.reshape(A, H * Vd).astype(jnp.bfloat16)
    ow = output_w.reshape(H * Vd, O).astype(jnp.bfloat16)
    ow = jnp.pad(ow, ((0, 0), (0, O_pad - O)))                      # (H*Vd, O_pad)

    kernel = functools.partial(_grid_self_attn_kernel,
                               num_head=H, key_dim=Kd, value_dim=Vd)

    # Grid: query-tile axis OUTER, batch INNER -> the (H, Tq, S) nonbatched_bias block
    # index is constant across the inner axis and is fetched only S/Tq times total.
    out = pl.pallas_call(
        kernel,
        out_shape=jax.ShapeDtypeStruct((B, S, O_pad), jnp.float32),
        grid_spec=pltpu.PrefetchScalarGridSpec(
            num_scalar_prefetch=0,
            grid=(S // q_tile, B),
            in_specs=[
                pl.BlockSpec((1, q_tile, A), lambda qi, b: (b, qi, 0)),   # x (query rows)
                pl.BlockSpec((1, S, A), lambda qi, b: (b, 0, 0)),         # x (key/value rows)
                pl.BlockSpec((1, q_tile, S), lambda qi, b: (b, qi, 0)),   # bias (bf16)
                pl.BlockSpec((H, q_tile, S), lambda qi, b: (0, qi, 0)),   # nonbatched_bias (bf16)
                pl.BlockSpec((A, H * Kd), lambda qi, b: (0, 0)),          # query_w slab (pre-scaled)
                pl.BlockSpec((M, H * Kd), lambda qi, b: (0, 0)),          # key_w   slab
                pl.BlockSpec((M, H * Vd), lambda qi, b: (0, 0)),          # value_w slab
                pl.BlockSpec((A, H * Vd), lambda qi, b: (0, 0)),          # gating_w slab
                pl.BlockSpec((H * Vd, O_pad), lambda qi, b: (0, 0)),      # output_w (padded O)
            ],
            out_specs=pl.BlockSpec((1, q_tile, O_pad), lambda qi, b: (b, qi, 0)),
            scratch_shapes=[pltpu.VMEM((q_tile, H * Vd), jnp.float32)],   # per-head wv slab
        ),
        compiler_params=pltpu.CompilerParams(
            dimension_semantics=("parallel", "parallel"),
            vmem_limit_bytes=vmem_limit),
    )(x_bf16, x_bf16, bias_bf16, nb_bf16, qw_slab, kw_slab, vw_slab, gw_slab, ow)

    return out[..., :O] if O_pad != O else out


def _reference(q_data, bias, nonbatched_bias,
               query_w, key_w, value_w, gating_w, output_w, key_dim):
    """Pure-JAX f32 reference of the fused op (for correctness check)."""
    q = jnp.einsum('bqa,ahc->bqhc', q_data, query_w) * key_dim ** -0.5
    k = jnp.einsum('bka,ahc->bkhc', q_data, key_w)
    v = jnp.einsum('bka,ahc->bkhc', q_data, value_w)
    logits = jnp.einsum('bqhc,bkhc->bhqk', q, k)
    logits = logits + bias[:, None, :, :] + nonbatched_bias[None, :, :, :]
    weights = jax.nn.softmax(logits, axis=-1)
    wv = jnp.einsum('bhqk,bkhc->bqhc', weights, v)
    gate = jax.nn.sigmoid(jnp.einsum('bqa,ahc->bqhc', q_data, gating_w))
    return jnp.einsum('bqhc,hco->bqo', wv * gate, output_w)


def _run_case(key, B, S, num_head, a_dim, m_dim, output_dim, q_tile=None):
    key_dim = a_dim // num_head
    value_dim = m_dim // num_head
    ks = jax.random.split(key, 8)
    q_data = jax.random.normal(ks[0], (B, S, a_dim), jnp.float32)
    bias = jax.random.normal(ks[1], (B, S, S), jnp.float32) * 0.1
    nonbatched_bias = jax.random.normal(ks[2], (num_head, S, S), jnp.float32) * 0.1

    def _init(k, shape, fan_in):
        return jax.random.normal(k, shape, jnp.float32) / np.sqrt(fan_in)

    query_w = _init(ks[3], (a_dim, num_head, key_dim), a_dim)
    key_w = _init(ks[4], (m_dim, num_head, key_dim), m_dim)
    value_w = _init(ks[5], (m_dim, num_head, value_dim), m_dim)
    gating_w = _init(ks[6], (a_dim, num_head, value_dim), a_dim)
    output_w = _init(ks[7], (num_head, value_dim, output_dim), num_head * value_dim)

    out = grid_self_attention(q_data, bias, nonbatched_bias,
                              query_w, key_w, value_w, gating_w, output_w,
                              q_tile=q_tile)
    out = jax.block_until_ready(out)

    ref = _reference(q_data, bias, nonbatched_bias,
                     query_w, key_w, value_w, gating_w, output_w, key_dim)
    # Tolerance reflects bf16 MXU inputs / bf16 bias & softmax weights + approx reciprocal.
    np.testing.assert_allclose(np.asarray(out), np.asarray(ref), rtol=2e-2, atol=2e-2)
    assert out.shape == (B, S, output_dim) and out.dtype == jnp.float32


if __name__ == "__main__":
    root = jax.random.PRNGKey(0)
    k1, k2 = jax.random.split(root)

    # Small module-consistent shapes: single query tile per batch (grid = (1, B)).
    _run_case(k1, B=2, S=16, num_head=4, a_dim=32, m_dim=32, output_dim=32)

    # Multi-tile path: S // q_tile = 2 and B = 2 (exercises qi > 0 tiling + bias offsets).
    _run_case(k2, B=2, S=32, num_head=4, a_dim=32, m_dim=32, output_dim=32, q_tile=16)

    print("KERNEL_OK")
</pallas_src>

<mosaic_0001>
module attributes {stable_mosaic.version = 11 : i64} {
  func.func @_grid_self_attn_kernel(%arg0: i32, %arg1: i32, %arg2: memref<1x16x32xbf16, #tpu.memory_space<vmem>>, %arg3: memref<1x16x32xbf16, #tpu.memory_space<vmem>>, %arg4: memref<1x16x16xbf16, #tpu.memory_space<vmem>>, %arg5: memref<4x16x16xbf16, #tpu.memory_space<vmem>>, %arg6: memref<32x32xbf16, #tpu.memory_space<vmem>>, %arg7: memref<32x32xbf16, #tpu.memory_space<vmem>>, %arg8: memref<32x32xbf16, #tpu.memory_space<vmem>>, %arg9: memref<32x32xbf16, #tpu.memory_space<vmem>>, %arg10: memref<32x128xbf16, #tpu.memory_space<vmem>>, %arg11: memref<1x16x128xf32, #tpu.memory_space<vmem>>, %arg12: memref<16x32xf32, #tpu.memory_space<vmem>>) attributes {dimension_semantics = [#tpu.dimension_semantics<parallel>, #tpu.dimension_semantics<parallel>], iteration_bounds = array<i64: 1, 2>, scalar_prefetch = 0 : i64, scratch_operands = 1 : i64, tpu.core_type = #tpu.core_type<tc>, window_params = [{transform_indices = @transform_0, window_bounds = array<i64: 1, 16, 32>}, {transform_indices = @transform_1, window_bounds = array<i64: 1, 16, 32>}, {transform_indices = @transform_2, window_bounds = array<i64: 1, 16, 16>}, {transform_indices = @transform_3, window_bounds = array<i64: 4, 16, 16>}, {pipeline_mode = #tpu.pipeline_mode<synchronous>, transform_indices = @transform_4, window_bounds = array<i64: 32, 32>}, {pipeline_mode = #tpu.pipeline_mode<synchronous>, transform_indices = @transform_5, window_bounds = array<i64: 32, 32>}, {pipeline_mode = #tpu.pipeline_mode<synchronous>, transform_indices = @transform_6, window_bounds = array<i64: 32, 32>}, {pipeline_mode = #tpu.pipeline_mode<synchronous>, transform_indices = @transform_7, window_bounds = array<i64: 32, 32>}, {pipeline_mode = #tpu.pipeline_mode<synchronous>, transform_indices = @transform_8, window_bounds = array<i64: 32, 128>}, {transform_indices = @transform_9, window_bounds = array<i64: 1, 16, 128>}]} {
    %c0 = arith.constant 0 : index
    %c0_0 = arith.constant 0 : index
    %c0_1 = arith.constant 0 : index
    %0 = vector.load %arg2[%c0, %c0_0, %c0_1] : memref<1x16x32xbf16, #tpu.memory_space<vmem>>, vector<1x16x32xbf16>
    %1 = vector.shape_cast %0 : vector<1x16x32xbf16> to vector<16x32xbf16>
    %c0_2 = arith.constant 0 : index
    %c0_3 = arith.constant 0 : index
    %c0_4 = arith.constant 0 : index
    %2 = vector.load %arg3[%c0_2, %c0_3, %c0_4] : memref<1x16x32xbf16, #tpu.memory_space<vmem>>, vector<1x16x32xbf16>
    %3 = vector.shape_cast %2 : vector<1x16x32xbf16> to vector<16x32xbf16>
    %c0_5 = arith.constant 0 : index
    %c0_6 = arith.constant 0 : index
    %c0_7 = arith.constant 0 : index
    %4 = vector.load %arg4[%c0_5, %c0_6, %c0_7] : memref<1x16x16xbf16, #tpu.memory_space<vmem>>, vector<1x16x16xbf16>
    %5 = vector.shape_cast %4 : vector<1x16x16xbf16> to vector<16x16xbf16>
    %6 = arith.extf %5 : vector<16x16xbf16> to vector<16x16xf32>
    %c0_8 = arith.constant 0 : index
    %c0_9 = arith.constant 0 : index
    %7 = vector.load %arg6[%c0_8, %c0_9] : memref<32x32xbf16, #tpu.memory_space<vmem>>, vector<32x32xbf16>
    %cst = arith.constant dense<0.000000e+00> : vector<16x32xf32>
    %8 = tpu.matmul %1, %7, %cst {dimension_numbers = #tpu.dot_dimension_numbers<[1], [0], [0], [1], [0, 0, 1, 1], [], []>} : vector<16x32xbf16>, vector<32x32xbf16>, vector<16x32xf32> -> vector<16x32xf32>
    %9 = arith.truncf %8 : vector<16x32xf32> to vector<16x32xbf16>
    %c0_10 = arith.constant 0 : index
    %c0_11 = arith.constant 0 : index
    %10 = vector.load %arg7[%c0_10, %c0_11] : memref<32x32xbf16, #tpu.memory_space<vmem>>, vector<32x32xbf16>
    %cst_12 = arith.constant dense<0.000000e+00> : vector<16x32xf32>
    %11 = tpu.matmul %3, %10, %cst_12 {dimension_numbers = #tpu.dot_dimension_numbers<[1], [0], [0], [1], [0, 0, 1, 1], [], []>} : vector<16x32xbf16>, vector<32x32xbf16>, vector<16x32xf32> -> vector<16x32xf32>
    %12 = arith.truncf %11 : vector<16x32xf32> to vector<16x32xbf16>
    %c0_13 = arith.constant 0 : index
    %c0_14 = arith.constant 0 : index
    %13 = vector.load %arg8[%c0_13, %c0_14] : memref<32x32xbf16, #tpu.memory_space<vmem>>, vector<32x32xbf16>
    %cst_15 = arith.constant dense<0.000000e+00> : vector<16x32xf32>
    %14 = tpu.matmul %3, %13, %cst_15 {dimension_numbers = #tpu.dot_dimension_numbers<[1], [0], [0], [1], [0, 0, 1, 1], [], []>} : vector<16x32xbf16>, vector<32x32xbf16>, vector<16x32xf32> -> vector<16x32xf32>
    %15 = arith.truncf %14 : vector<16x32xf32> to vector<16x32xbf16>
    %c0_16 = arith.constant 0 : index
    %c0_17 = arith.constant 0 : index
    %16 = vector.load %arg9[%c0_16, %c0_17] : memref<32x32xbf16, #tpu.memory_space<vmem>>, vector<32x32xbf16>
    %cst_18 = arith.constant dense<0.000000e+00> : vector<16x32xf32>
    %17 = tpu.matmul %1, %16, %cst_18 {dimension_numbers = #tpu.dot_dimension_numbers<[1], [0], [0], [1], [0, 0, 1, 1], [], []>} : vector<16x32xbf16>, vector<32x32xbf16>, vector<16x32xf32> -> vector<16x32xf32>
    %18 = arith.negf %17 : vector<16x32xf32>
    %19 = math.exp %18 : vector<16x32xf32>
    %cst_19 = arith.constant 1.000000e+00 : f32
    %20 = vector.broadcast %cst_19 : f32 to vector<16x32xf32>
    %21 = arith.addf %20, %19 : vector<16x32xf32>
    %22 = arith.divf %20, %21 : vector<16x32xf32>
    %23 = vector.extract_strided_slice %9 {offsets = [0, 0], sizes = [16, 8], strides = [1, 1]} : vector<16x32xbf16> to vector<16x8xbf16>
    %24 = vector.extract_strided_slice %12 {offsets = [0, 0], sizes = [16, 8], strides = [1, 1]} : vector<16x32xbf16> to vector<16x8xbf16>
    %25 = vector.extract_strided_slice %15 {offsets = [0, 0], sizes = [16, 8], strides = [1, 1]} : vector<16x32xbf16> to vector<16x8xbf16>
    %cst_20 = arith.constant dense<0.000000e+00> : vector<16x16xf32>
    %26 = tpu.matmul %23, %24, %cst_20 {dimension_numbers = #tpu.dot_dimension_numbers<[1], [1], [0], [0], [0, 0, 1, 0], [], []>} : vector<16x8xbf16>, vector<16x8xbf16>, vector<16x16xf32> -> vector<16x16xf32>
    %27 = arith.addf %26, %6 : vector<16x16xf32>
    %c0_21 = arith.constant 0 : index
    %c0_22 = arith.constant 0 : index
    %c0_23 = arith.constant 0 : index
    %28 = vector.load %arg5[%c0_21, %c0_22, %c0_23] : memref<4x16x16xbf16, #tpu.memory_space<vmem>>, vector<1x16x16xbf16>
    %29 = vector.shape_cast %28 : vector<1x16x16xbf16> to vector<16x16xbf16>
    %30 = arith.extf %29 : vector<16x16xbf16> to vector<16x16xf32>
    %31 = arith.addf %27, %30 : vector<16x16xf32>
    %cst_24 = arith.constant dense<0xFF800000> : vector<16xf32>
    %32 = vector.multi_reduction <maximumf>, %31, %cst_24 [1] : vector<16x16xf32> to vector<16xf32>
    %33 = vector.shape_cast %32 : vector<16xf32> to vector<16x1xf32>
    %34 = vector.broadcast %33 : vector<16x1xf32> to vector<16x16xf32>
    %35 = arith.subf %31, %34 : vector<16x16xf32>
    %36 = math.exp %35 : vector<16x16xf32>
    %cst_25 = arith.constant dense<0.000000e+00> : vector<16xf32>
    %37 = vector.multi_reduction <add>, %36, %cst_25 [1] : vector<16x16xf32> to vector<16xf32>
    %38 = vector.shape_cast %37 : vector<16xf32> to vector<16x1xf32>
    %39 = tpu.reciprocal %38 {approx = true} : vector<16x1xf32> -> vector<16x1xf32>
    %40 = arith.truncf %36 : vector<16x16xf32> to vector<16x16xbf16>
    %cst_26 = arith.constant dense<0.000000e+00> : vector<16x8xf32>
    %41 = tpu.matmul %40, %25, %cst_26 {dimension_numbers = #tpu.dot_dimension_numbers<[1], [0], [0], [1], [0, 0, 1, 1], [], []>} : vector<16x16xbf16>, vector<16x8xbf16>, vector<16x8xf32> -> vector<16x8xf32>
    %42 = vector.broadcast %39 : vector<16x1xf32> to vector<16x8xf32>
    %43 = arith.mulf %41, %42 : vector<16x8xf32>
    %c0_27 = arith.constant 0 : index
    %c0_28 = arith.constant 0 : index
    %44 = vector.load %arg12[%c0_27, %c0_28] : memref<16x32xf32, #tpu.memory_space<vmem>>, vector<16x8xf32>
    tpu.vector_store %arg12[%c0_27, %c0_28], %43 {strides = array<i32>} : memref<16x32xf32, #tpu.memory_space<vmem>>, vector<16x8xf32>,
    %45 = vector.extract_strided_slice %9 {offsets = [0, 8], sizes = [16, 8], strides = [1, 1]} : vector<16x32xbf16> to vector<16x8xbf16>
    %46 = vector.extract_strided_slice %12 {offsets = [0, 8], sizes = [16, 8], strides = [1, 1]} : vector<16x32xbf16> to vector<16x8xbf16>
    %47 = vector.extract_strided_slice %15 {offsets = [0, 8], sizes = [16, 8], strides = [1, 1]} : vector<16x32xbf16> to vector<16x8xbf16>
    %cst_29 = arith.constant dense<0.000000e+00> : vector<16x16xf32>
    %48 = tpu.matmul %45, %46, %cst_29 {dimension_numbers = #tpu.dot_dimension_numbers<[1], [1], [0], [0], [0, 0, 1, 0], [], []>} : vector<16x8xbf16>, vector<16x8xbf16>, vector<16x16xf32> -> vector<16x16xf32>
    %49 = arith.addf %48, %6 : vector<16x16xf32>
    %c1 = arith.constant 1 : index
    %c0_30 = arith.constant 0 : index
    %c0_31 = arith.constant 0 : index
    %50 = vector.load %arg5[%c1, %c0_30, %c0_31] : memref<4x16x16xbf16, #tpu.memory_space<vmem>>, vector<1x16x16xbf16>
    %51 = vector.shape_cast %50 : vector<1x16x16xbf16> to vector<16x16xbf16>
    %52 = arith.extf %51 : vector<16x16xbf16> to vector<16x16xf32>
    %53 = arith.addf %49, %52 : vector<16x16xf32>
    %cst_32 = arith.constant dense<0xFF800000> : vector<16xf32>
    %54 = vector.multi_reduction <maximumf>, %53, %cst_32 [1] : vector<16x16xf32> to vector<16xf32>
    %55 = vector.shape_cast %54 : vector<16xf32> to vector<16x1xf32>
    %56 = vector.broadcast %55 : vector<16x1xf32> to vector<16x16xf32>
    %57 = arith.subf %53, %56 : vector<16x16xf32>
    %58 = math.exp %57 : vector<16x16xf32>
    %cst_33 = arith.constant dense<0.000000e+00> : vector<16xf32>
    %59 = vector.multi_reduction <add>, %58, %cst_33 [1] : vector<16x16xf32> to vector<16xf32>
    %60 = vector.shape_cast %59 : vector<16xf32> to vector<16x1xf32>
    %61 = tpu.reciprocal %60 {approx = true} : vector<16x1xf32> -> vector<16x1xf32>
    %62 = arith.truncf %58 : vector<16x16xf32> to vector<16x16xbf16>
    %cst_34 = arith.constant dense<0.000000e+00> : vector<16x8xf32>
    %63 = tpu.matmul %62, %47, %cst_34 {dimension_numbers = #tpu.dot_dimension_numbers<[1], [0], [0], [1], [0, 0, 1, 1], [], []>} : vector<16x16xbf16>, vector<16x8xbf16>, vector<16x8xf32> -> vector<16x8xf32>
    %64 = vector.broadcast %61 : vector<16x1xf32> to vector<16x8xf32>
    %65 = arith.mulf %63, %64 : vector<16x8xf32>
    %c0_35 = arith.constant 0 : index
    %c8 = arith.constant 8 : index
    %66 = vector.load %arg12[%c0_35, %c8] : memref<16x32xf32, #tpu.memory_space<vmem>>, vector<16x8xf32>
    tpu.vector_store %arg12[%c0_35, %c8], %65 {strides = array<i32>} : memref<16x32xf32, #tpu.memory_space<vmem>>, vector<16x8xf32>,
    %67 = vector.extract_strided_slice %9 {offsets = [0, 16], sizes = [16, 8], strides = [1, 1]} : vector<16x32xbf16> to vector<16x8xbf16>
    %68 = vector.extract_strided_slice %12 {offsets = [0, 16], sizes = [16, 8], strides = [1, 1]} : vector<16x32xbf16> to vector<16x8xbf16>
    %69 = vector.extract_strided_slice %15 {offsets = [0, 16], sizes = [16, 8], strides = [1, 1]} : vector<16x32xbf16> to vector<16x8xbf16>
    %cst_36 = arith.constant dense<0.000000e+00> : vector<16x16xf32>
    %70 = tpu.matmul %67, %68, %cst_36 {dimension_numbers = #tpu.dot_dimension_numbers<[1], [1], [0], [0], [0, 0, 1, 0], [], []>} : vector<16x8xbf16>, vector<16x8xbf16>, vector<16x16xf32> -> vector<16x16xf32>
    %71 = arith.addf %70, %6 : vector<16x16xf32>
    %c2 = arith.constant 2 : index
    %c0_37 = arith.constant 0 : index
    %c0_38 = arith.constant 0 : index
    %72 = vector.load %arg5[%c2, %c0_37, %c0_38] : memref<4x16x16xbf16, #tpu.memory_space<vmem>>, vector<1x16x16xbf16>
    %73 = vector.shape_cast %72 : vector<1x16x16xbf16> to vector<16x16xbf16>
    %74 = arith.extf %73 : vector<16x16xbf16> to vector<16x16xf32>
    %75 = arith.addf %71, %74 : vector<16x16xf32>
    %cst_39 = arith.constant dense<0xFF800000> : vector<16xf32>
    %76 = vector.multi_reduction <maximumf>, %75, %cst_39 [1] : vector<16x16xf32> to vector<16xf32>
    %77 = vector.shape_cast %76 : vector<16xf32> to vector<16x1xf32>
    %78 = vector.broadcast %77 : vector<16x1xf32> to vector<16x16xf32>
    %79 = arith.subf %75, %78 : vector<16x16xf32>
    %80 = math.exp %79 : vector<16x16xf32>
    %cst_40 = arith.constant dense<0.000000e+00> : vector<16xf32>
    %81 = vector.multi_reduction <add>, %80, %cst_40 [1] : vector<16x16xf32> to vector<16xf32>
    %82 = vector.shape_cast %81 : vector<16xf32> to vector<16x1xf32>
    %83 = tpu.reciprocal %82 {approx = true} : vector<16x1xf32> -> vector<16x1xf32>
    %84 = arith.truncf %80 : vector<16x16xf32> to vector<16x16xbf16>
    %cst_41 = arith.constant dense<0.000000e+00> : vector<16x8xf32>
    %85 = tpu.matmul %84, %69, %cst_41 {dimension_numbers = #tpu.dot_dimension_numbers<[1], [0], [0], [1], [0, 0, 1, 1], [], []>} : vector<16x16xbf16>, vector<16x8xbf16>, vector<16x8xf32> -> vector<16x8xf32>
    %86 = vector.broadcast %83 : vector<16x1xf32> to vector<16x8xf32>
    %87 = arith.mulf %85, %86 : vector<16x8xf32>
    %c0_42 = arith.constant 0 : index
    %c16 = arith.constant 16 : index
    %88 = vector.load %arg12[%c0_42, %c16] : memref<16x32xf32, #tpu.memory_space<vmem>>, vector<16x8xf32>
    tpu.vector_store %arg12[%c0_42, %c16], %87 {strides = array<i32>} : memref<16x32xf32, #tpu.memory_space<vmem>>, vector<16x8xf32>,
    %89 = vector.extract_strided_slice %9 {offsets = [0, 24], sizes = [16, 8], strides = [1, 1]} : vector<16x32xbf16> to vector<16x8xbf16>
    %90 = vector.extract_strided_slice %12 {offsets = [0, 24], sizes = [16, 8], strides = [1, 1]} : vector<16x32xbf16> to vector<16x8xbf16>
    %91 = vector.extract_strided_slice %15 {offsets = [0, 24], sizes = [16, 8], strides = [1, 1]} : vector<16x32xbf16> to vector<16x8xbf16>
    %cst_43 = arith.constant dense<0.000000e+00> : vector<16x16xf32>
    %92 = tpu.matmul %89, %90, %cst_43 {dimension_numbers = #tpu.dot_dimension_numbers<[1], [1], [0], [0], [0, 0, 1, 0], [], []>} : vector<16x8xbf16>, vector<16x8xbf16>, vector<16x16xf32> -> vector<16x16xf32>
    %93 = arith.addf %92, %6 : vector<16x16xf32>
    %c3 = arith.constant 3 : index
    %c0_44 = arith.constant 0 : index
    %c0_45 = arith.constant 0 : index
    %94 = vector.load %arg5[%c3, %c0_44, %c0_45] : memref<4x16x16xbf16, #tpu.memory_space<vmem>>, vector<1x16x16xbf16>
    %95 = vector.shape_cast %94 : vector<1x16x16xbf16> to vector<16x16xbf16>
    %96 = arith.extf %95 : vector<16x16xbf16> to vector<16x16xf32>
    %97 = arith.addf %93, %96 : vector<16x16xf32>
    %cst_46 = arith.constant dense<0xFF800000> : vector<16xf32>
    %98 = vector.multi_reduction <maximumf>, %97, %cst_46 [1] : vector<16x16xf32> to vector<16xf32>
    %99 = vector.shape_cast %98 : vector<16xf32> to vector<16x1xf32>
    %100 = vector.broadcast %99 : vector<16x1xf32> to vector<16x16xf32>
    %101 = arith.subf %97, %100 : vector<16x16xf32>
    %102 = math.exp %101 : vector<16x16xf32>
    %cst_47 = arith.constant dense<0.000000e+00> : vector<16xf32>
    %103 = vector.multi_reduction <add>, %102, %cst_47 [1] : vector<16x16xf32> to vector<16xf32>
    %104 = vector.shape_cast %103 : vector<16xf32> to vector<16x1xf32>
    %105 = tpu.reciprocal %104 {approx = true} : vector<16x1xf32> -> vector<16x1xf32>
    %106 = arith.truncf %102 : vector<16x16xf32> to vector<16x16xbf16>
    %cst_48 = arith.constant dense<0.000000e+00> : vector<16x8xf32>
    %107 = tpu.matmul %106, %91, %cst_48 {dimension_numbers = #tpu.dot_dimension_numbers<[1], [0], [0], [1], [0, 0, 1, 1], [], []>} : vector<16x16xbf16>, vector<16x8xbf16>, vector<16x8xf32> -> vector<16x8xf32>
    %108 = vector.broadcast %105 : vector<16x1xf32> to vector<16x8xf32>
    %109 = arith.mulf %107, %108 : vector<16x8xf32>
    %c0_49 = arith.constant 0 : index
    %c24 = arith.constant 24 : index
    %110 = vector.load %arg12[%c0_49, %c24] : memref<16x32xf32, #tpu.memory_space<vmem>>, vector<16x8xf32>
    tpu.vector_store %arg12[%c0_49, %c24], %109 {strides = array<i32>} : memref<16x32xf32, #tpu.memory_space<vmem>>, vector<16x8xf32>,
    %c0_50 = arith.constant 0 : index
    %c0_51 = arith.constant 0 : index
    %111 = vector.load %arg12[%c0_50, %c0_51] : memref<16x32xf32, #tpu.memory_space<vmem>>, vector<16x32xf32>
    %112 = arith.mulf %111, %22 : vector<16x32xf32>
    %113 = arith.truncf %112 : vector<16x32xf32> to vector<16x32xbf16>
    %c0_52 = arith.constant 0 : index
    %c0_53 = arith.constant 0 : index
    %114 = vector.load %arg10[%c0_52, %c0_53] : memref<32x128xbf16, #tpu.memory_space<vmem>>, vector<32x128xbf16>
    %cst_54 = arith.constant dense<0.000000e+00> : vector<16x128xf32>
    %115 = tpu.matmul %113, %114, %cst_54 {dimension_numbers = #tpu.dot_dimension_numbers<[1], [0], [0], [1], [0, 0, 1, 1], [], []>} : vector<16x32xbf16>, vector<32x128xbf16>, vector<16x128xf32> -> vector<16x128xf32>
    %c0_55 = arith.constant 0 : index
    %c0_56 = arith.constant 0 : index
    %c0_57 = arith.constant 0 : index
    %116 = vector.load %arg11[%c0_55, %c0_56, %c0_57] : memref<1x16x128xf32, #tpu.memory_space<vmem>>, vector<1x16x128xf32>
    %117 = vector.shape_cast %116 : vector<1x16x128xf32> to vector<16x128xf32>
    %118 = vector.shape_cast %115 : vector<16x128xf32> to vector<1x16x128xf32>
    tpu.vector_store %arg11[%c0_55, %c0_56, %c0_57], %118 {strides = array<i32>} : memref<1x16x128xf32, #tpu.memory_space<vmem>>, vector<1x16x128xf32>,
    return
  }
  func.func @transform_0(%arg0: i32, %arg1: i32) -> (i32, i32, i32) {
    %c0_i32 = arith.constant 0 : i32
    %c0_i32_0 = arith.constant 0 : i32
    return %arg1, %arg0, %c0_i32 : i32, i32, i32
  }
  func.func @transform_1(%arg0: i32, %arg1: i32) -> (i32, i32, i32) {
    %c0_i32 = arith.constant 0 : i32
    %c0_i32_0 = arith.constant 0 : i32
    %c0_i32_1 = arith.constant 0 : i32
    return %arg1, %c0_i32, %c0_i32_0 : i32, i32, i32
  }
  func.func @transform_2(%arg0: i32, %arg1: i32) -> (i32, i32, i32) {
    %c0_i32 = arith.constant 0 : i32
    %c0_i32_0 = arith.constant 0 : i32
    return %arg1, %arg0, %c0_i32 : i32, i32, i32
  }
  func.func @transform_3(%arg0: i32, %arg1: i32) -> (i32, i32, i32) {
    %c0_i32 = arith.constant 0 : i32
    %c0_i32_0 = arith.constant 0 : i32
    %c0_i32_1 = arith.constant 0 : i32
    return %c0_i32, %arg0, %c0_i32_0 : i32, i32, i32
  }
  func.func @transform_4(%arg0: i32, %arg1: i32) -> (i32, i32) {
    %c0_i32 = arith.constant 0 : i32
    %c0_i32_0 = arith.constant 0 : i32
    %c0_i32_1 = arith.constant 0 : i32
    return %c0_i32, %c0_i32_0 : i32, i32
  }
  func.func @transform_5(%arg0: i32, %arg1: i32) -> (i32, i32) {
    %c0_i32 = arith.constant 0 : i32
    %c0_i32_0 = arith.constant 0 : i32
    %c0_i32_1 = arith.constant 0 : i32
    return %c0_i32, %c0_i32_0 : i32, i32
  }
  func.func @transform_6(%arg0: i32, %arg1: i32) -> (i32, i32) {
    %c0_i32 = arith.constant 0 : i32
    %c0_i32_0 = arith.constant 0 : i32
    %c0_i32_1 = arith.constant 0 : i32
    return %c0_i32, %c0_i32_0 : i32, i32
  }
  func.func @transform_7(%arg0: i32, %arg1: i32) -> (i32, i32) {
    %c0_i32 = arith.constant 0 : i32
    %c0_i32_0 = arith.constant 0 : i32
    %c0_i32_1 = arith.constant 0 : i32
    return %c0_i32, %c0_i32_0 : i32, i32
  }
  func.func @transform_8(%arg0: i32, %arg1: i32) -> (i32, i32) {
    %c0_i32 = arith.constant 0 : i32
    %c0_i32_0 = arith.constant 0 : i32
    %c0_i32_1 = arith.constant 0 : i32
    return %c0_i32, %c0_i32_0 : i32, i32
  }
  func.func @transform_9(%arg0: i32, %arg1: i32) -> (i32, i32, i32) {
    %c0_i32 = arith.constant 0 : i32
    %c0_i32_0 = arith.constant 0 : i32
    return %arg1, %arg0, %c0_i32 : i32, i32, i32
  }
}

</mosaic_0001>

<bundles_post_ra>
// kernel: tpu_custom_call.1
= control target key start
LH: loop header
LB: loop body
LE: loop exit
PB: predicated region body
PF: predicated region fallthrough
CT: control target
= control target key end

     0   :  { %s2947_s0 = inlined_call_operand.hbm [shape: bf16[2,16,32], index: 0, kind: input, shape index: {}]   ;;  %s2948_s1 = inlined_call_operand.hbm [shape: bf16[2,16,32], index: 1, kind: input, shape index: {}]   ;;  %s2949_s2 = inlined_call_operand.hbm [shape: bf16[2,16,16], index: 2, kind: input, shape index: {}]   ;;  %s2950_s3 = inlined_call_operand.hbm [shape: bf16[4,16,16], index: 3, kind: input, shape index: {}]   ;;  %s2951_s4 = inlined_call_operand.hbm [shape: bf16[32,32], index: 4, kind: input, shape index: {}]   ;;  %s2952_s5 = inlined_call_operand.vmem [shape: bf16[32,32], index: 5, kind: input, shape index: {}]   ;;  %s2953_s6 = inlined_call_operand.hbm [shape: bf16[32,32], index: 6, kind: input, shape index: {}]   ;;  %s2954_s7 = inlined_call_operand.hbm [shape: bf16[32,32], index: 7, kind: input, shape index: {}]   ;;  %s2955_s8 = inlined_call_operand.hbm [shape: bf16[32,128], index: 8, kind: input, shape index: {}]   ;;  %s2956_s9 = inlined_call_operand.hbm [shape: f32[2,16,128], index: 9, kind: output, shape index: {}]  }
   0x1   :  { %2986 = sst [smem:[#allocation33_spill]] %s2948_s1 }
   0x2   :  { %2987 = sst [smem:[#allocation34_spill]] %s2950_s3 }
   0x3   :  { %2988 = sst [smem:[#allocation35_spill]] %s2952_s5 }
   0x4   :  { %2989 = sst [smem:[#allocation36_spill]] %s2953_s6 }
   0x5   :  { %2990 = sst [smem:[#allocation37_spill]] %s2956_s9 }
   0x6   :  { %14 = vsyncpa [#allocation4], 0 }
   0x7   :  { %16 = vsyncpa [#allocation4 + $0x1], 0 }
   0x8   :  { %17 = vsyncpa [#allocation7], 0 }
   0x9   :  { %19 = vsyncpa [#allocation7 + $0x1], 0 }
   0xa   :  { %20 = vsyncpa [#allocation10], 0 }
   0xb   :  { %21 = vsyncpa [#allocation13], 0 }
   0xc   :  { %22 = vsyncpa [#allocation16], 0 }
   0xd   :  { %23 = vsyncpa [#allocation5], 0 }
   0xe   :  { %25 = vsyncpa [#allocation5 + $0x1], 0  ;;  %s2403_s30 = smov 0   ;;  %s2405_s10 = smov 0  }
   0xf   :  { %s2407_s11 = smov 0   ;;  %s2409_s12 = smov 0  }
  0x10   :  { %s2411_s13 = smov 0   ;;  %s2413_s14 = smov 0  }
  0x11 LB: > { %2991 = sst [smem:[#allocation24_spill]] %s2311_s30  ;;  %s2434_s15 = sadd.s32 4294967295, %s2331_s14   ;;  %s2331_s14 = sphi %s2413_s14, %s31_s14   ;;  %s2327_s13 = sphi %s2411_s13, %s3044_s13   ;;  %s2323_s12 = sphi %s2409_s12, %s3039_s12   ;;  %s2319_s11 = sphi %s2407_s11, %s3043_s11   ;;  %s2315_s10 = sphi %s2405_s10, %s3042_s10   ;;  %s2311_s30 = sphi %s2403_s30, %s3041_s30  }
  0x12   : > { %2992 = sst [smem:[#allocation25_spill]] %s2323_s12  ;;  %p1616_p0 = scmp.ge.s32.totalorder %s2331_s14, 1 }
  0x13   : > { %2993 = sst [smem:[#allocation26_spill]] %s2327_s13  ;;  %p2968_p1 = scmp.eq.s32.totalorder %s2434_s15, 0 }
  0x14   : > { %2994 = sst [smem:[#allocation27_spill]] %s2331_s14  ;;  %p289_p3 = scmp.lt.s32.totalorder %s2331_s14, 3 }
  0x15   : > { %2995 = sst [smem:[#allocation28_spill]] %s2434_s15  ;;  %s2333_s17 = smov [#allocation9]  }
  0x16   : > { %p2440_p4 = pnand %p1616_p0, %p289_p3  ;;  %s304_s18 = sshll.u32 %s2333_s17, 4  ;;  %s2444_s18 = int_to_ptr.vmem [resolvable:$true] %s304_s18 }
  0x17   : > { %s2334_s20 = smov [#allocation12]   ;;  %s2998_s3 = sld [smem:[#allocation34_spill]] }
  0x18   : > { %s2996_s16 = scalar_select %p2440_p4, 1, 0 }
  0x19   : > { %p1845_p5 = pneg %p2440_p4  ;;  %s333_s21 = sshll.u32 %s2334_s20, 4  ;;  %s2455_s21 = int_to_ptr.vmem [resolvable:$true] %s333_s21 }
  0x1b   : > { %p2451_p7 = pnand %p1845_p5, %p2968_p1 }
  0x1d   : > { %s2997_s19 = scalar_select %p2451_p7, 1, 0 }
  0x1e   : > { %s2003_s24 = scalar_lea.hbm %s2998_s3, 512  ;;  %p2465_p9 = pneg %p2451_p7 }
  0x1f   : > { %p2004_p8 = scmp.ne.s32.totalorder %s2998_s3, %s2003_s24  ;;  %p2010_p12 = scmp.lt.u32.totalorder %s2003_s24, %s2998_s3 }
  0x20   : > { %s2999_s27 = scalar_select %p2465_p9, 1, 0 }
  0x21   : > { %p2006_p10 = pnand %p2465_p9, %p2004_p8 }
  0x23   : > { %p2007_p11 = pneg %p2006_p10 }
  0x25   : > { %p2012_p13 = pnand %p2010_p12, %p2007_p11 }
  0x27   : > { %2015 = shalt.err (!%p2012_p13)
}
  0x28   : > { %s2016_s17 = scalar_lea.vmem %s2444_s18, 512  ;;  %p2024_p6 = scmp.lt.s32.totalorder %s2444_s18, %s2444_s18 }
  0x29   : > { %p2017_p0 = scmp.ne.s32.totalorder %s2444_s18, %s2016_s17  ;;  %p2025_p2 = scmp.lt.s32.totalorder %s2016_s17, %s2016_s17 }
  0x2b   : > { %p2019_p3 = pnand %p2017_p0, %p2465_p9  ;;  %p2026_p8 = por %p2025_p2, %p2024_p6 }
  0x2d   : > { %p2020_p5 = pneg %p2019_p3 }
  0x2f   : > { %p2027_p10 = pnand %p2026_p8, %p2020_p5 }
  0x31   : > { %2030 = shalt.err (!%p2027_p10)
}
  0x32   : > { %s2959_s20 = smov 64   ;;  %s2961_s22 = smov 4  }
  0x33   : > { %1848 = dma.hbm_to_vmem [thread:$0]  (!%p2451_p7), %s2998_s3, 512, %s2444_s18, [#allocation10], %s2959_s20, %s2959_s20, %s2961_s22  }
  0x34   : > { %s3000_s6 = sld [smem:[#allocation36_spill]] }
  0x3a   : > { %s2031_s28 = scalar_lea.hbm %s3000_s6, 256 }
  0x3b   : > { %p2032_p2 = scmp.ne.s32.totalorder %s3000_s6, %s2031_s28  ;;  %p2038_p12 = scmp.lt.u32.totalorder %s2031_s28, %s3000_s6 }
  0x3d   : > { %p2034_p6 = pnand %p2032_p2, %p2465_p9 }
  0x3f   : > { %p2035_p11 = pneg %p2034_p6 }
  0x41   : > { %p2040_p13 = pnand %p2038_p12, %p2035_p11 }
  0x43   : > { %2043 = shalt.err (!%p2040_p13)
}
  0x44   : > { %s2044_s18 = scalar_lea.vmem %s2455_s21, 256  ;;  %p2052_p8 = scmp.lt.s32.totalorder %s2455_s21, %s2455_s21 }
  0x45   : > { %p2045_p0 = scmp.ne.s32.totalorder %s2455_s21, %s2044_s18  ;;  %p2053_p10 = scmp.lt.s32.totalorder %s2044_s18, %s2044_s18 }
  0x47   : > { %p2047_p3 = pnand %p2045_p0, %p2465_p9  ;;  %p2054_p2 = por %p2053_p10, %p2052_p8 }
  0x49   : > { %p2048_p5 = pneg %p2047_p3 }
  0x4b   : > { %p2055_p6 = pnand %p2054_p2, %p2048_p5 }
  0x4d   : > { %2058 = shalt.err (!%p2055_p6)
}
  0x4e   : > { %1854 = dma.hbm_to_vmem [thread:$0]  (!%p2451_p7), %s3000_s6, 256, %s2455_s21, [#allocation13], %s2959_s20, %s2959_s20, %s2961_s22  }
  0x4f   : > { %s1615_s23 = sadd.s32 4294967294, %s2331_s14   ;;  %s40_s24 = sadd.s32 1, %s2327_s13 }
  0x50   : > { %s52_s25 = sadd.s32 1, %s2319_s11  ;;  %p41_p11 = scmp.ge.s32.totalorder %s40_s24, 2 }
  0x51   : > { %p59_p12 = scmp.ne.s32.totalorder %s2319_s11, %s2315_s10  ;;  %p60_p13 = scmp.eq.s32.totalorder %s2331_s14, 0 }
  0x52   : > { %p65_p0 = scmp.ne.s32.totalorder %s2315_s10, %s2311_s30  ;;  %s3046_s24 = smov (%p41_p11, %s40_s24), 0 }
  0x53   : > { %3001 = sst [smem:[#allocation29_spill]] %s3046_s24  ;;  %p61_p3 = por %p60_p13, %p59_p12 }
  0x54   : > { %p2527_p5 = por %p2968_p1, %p65_p0  ;;  %s47_s21 = ssub.s32 %s2327_s13, %s3046_s24 }
  0x55   : > { %p3003_p8 = scmp.eq.s32.totalorder %s2434_s15, 1  ;;  %p50_p2 = scmp.eq.s32.totalorder %s47_s21, 0 }
  0x56   : > { %s3002_s26 = scalar_select %p2527_p5, 1, 0 }
  0x57   : > { %p2535_p10 = por %p3003_p8, %p59_p12  ;;  %p282_p6 = scmp.eq.s32.totalorder %s1615_s23, 1 }
  0x58   : > { %p1880_p4 = scmp.lt.s32.totalorder %s2331_s14, 2  ;;  %s2963_s29 = sand.u32 1, %s2319_s11  }
  0x59   : > { %s3004_s28 = scalar_select %p2535_p10, 1, 0 }
  0x5a   : > { %s2542_s17 = scalar_select %p50_p2, %s2319_s11, %s52_s25  }
  0x5b   : > { %3005 = sst [smem:[#allocation30_spill]] %s3004_s28  ;;  %p2544_p11 = por %p282_p6, %p65_p0 }
  0x5c   : > { %3006 = sst [smem:[#allocation31_spill]] %s2542_s17  ;;  %s2550_s9 = sshll.u32 %s2963_s29, 3 }
  0x5d   : > { %s3007_s18 = scalar_select %p2544_p11, 1, 0 }
  0x5e   : > { %s2553_s12 = sshll.u32 %s2327_s13, 7  ;;  %p2555_p12 = pnand %p1880_p4, %p61_p3 }
  0x5f   : > { %3008 = sst [smem:[#allocation32_spill]] %s3007_s18  ;;  %s396_s23 = sand.u32 1, %s2331_s14  }
  0x60   : > { %s3009_s20 = scalar_select %p2555_p12, 1, 0 }
  0x61   : > { %s3010_s1 = sld [smem:[#allocation33_spill]]  ;;  %s400_s29 = scalar_lea.vmem [#allocation6], %s2550_s9 }
  0x62   : > { %s407_s3 = sshll.u32 %s400_s29, 4  ;;  %s2569_s6 = scalar_lea.sflag [#allocation7], %s396_s23  ;;  %s2567_s3 = int_to_ptr.vmem [resolvable:$true] %s407_s3 }
  0x63   : > { %p2575_p13 = pneg %p2555_p12 }
  0x65   : > { %s3011_s13 = scalar_select %p2575_p13, 1, 0 }
  0x67   : > { %s2564_s22 = scalar_lea.hbm %s3010_s1, %s2553_s12  ;;  %s2064_s17 = scalar_lea.hbm %s3010_s1, 256 }
  0x68   : > { %s2059_s24 = scalar_lea.hbm %s2564_s22, 128  ;;  %p2065_p8 = scmp.lt.u32.totalorder %s2564_s22, %s3010_s1 }
  0x69   : > { %p2060_p4 = scmp.ne.s32.totalorder %s2564_s22, %s2059_s24  ;;  %p2066_p2 = scmp.lt.u32.totalorder %s2064_s17, %s2059_s24 }
  0x6a   : > { %p2068_p1 = scmp.lt.u32.totalorder %s2059_s24, %s2564_s22 }
  0x6b   : > { %p2062_p0 = pnand %p2575_p13, %p2060_p4  ;;  %p2067_p6 = por %p2066_p2, %p2065_p8 }
  0x6d   : > { %p2063_p3 = pneg %p2062_p0  ;;  %p2069_p11 = por %p2068_p1, %p2067_p6 }
  0x6f   : > { %p2070_p10 = pnand %p2069_p11, %p2063_p3 }
  0x71   : > { %2073 = shalt.err (!%p2070_p10)
}
  0x72   : > { %s2074_s23 = scalar_lea.vmem %s2567_s3, 128  ;;  %s2337_s21 = smov [#allocation6]  }
  0x73   : > { %p2075_p4 = scmp.ne.s32.totalorder %s2567_s3, %s2074_s23  ;;  %s2079_s25 = sshll.u32 %s2337_s21, 4  ;;  %s2080_s25 = int_to_ptr.vmem [resolvable:$false] %s2079_s25 }
  0x74   : > { %s2081_s14 = scalar_lea.vmem %s2080_s25, 256  ;;  %p2082_p7 = scmp.lt.s32.totalorder %s2567_s3, %s2080_s25 }
  0x75   : > { %p2077_p0 = pnand %p2075_p4, %p2575_p13  ;;  %p2083_p9 = scmp.lt.s32.totalorder %s2081_s14, %s2074_s23 }
  0x77   : > { %p2078_p5 = pneg %p2077_p0  ;;  %p2084_p8 = por %p2083_p9, %p2082_p7 }
  0x79   : > { %p2085_p2 = pnand %p2084_p8, %p2078_p5 }
  0x7b   : > { %2088 = shalt.err (!%p2085_p2)
}
  0x7c   : > { %s3012_s24 = smov 4   ;;  %s3013_s17 = smov 64  }
  0x7d   : > { %1867 = dma.hbm_to_vmem [thread:$0]  (!%p2555_p12), %s2564_s22, 128, %s2567_s3, %s2569_s6, %s3013_s17, %s3013_s17, %s3012_s24  }
  0x7e   : > { %s2338_s29 = smov [#allocation11]   ;;  %s2339_s21 = smov [#allocation14]  }
  0x7f   : > { %s317_s1 = sshll.u32 %s2338_s29, 4  ;;  %s346_s18 = sshll.u32 %s2339_s21, 4  ;;  %s318_s1 = int_to_ptr.vmem [resolvable:$true] %s317_s1  ;;  %s347_s18 = int_to_ptr.vmem [resolvable:$true] %s346_s18 }
  0x80   : > { %s2089_s14 = scalar_lea.hbm %s2951_s4, 256  ;;  %p3014_p7 = scmp.ne.s32.totalorder %s2999_s27, 0 }
  0x81   : > { %p2090_p1 = scmp.ne.s32.totalorder %s2951_s4, %s2089_s14  ;;  %p2096_p10 = scmp.lt.u32.totalorder %s2089_s14, %s2951_s4 }
  0x83   : > { %p2092_p9 = pnand %p2090_p1, %p3014_p7 }
  0x85   : > { %p2093_p5 = pneg %p2092_p9 }
  0x87   : > { %p2098_p11 = pnand %p2096_p10, %p2093_p5 }
  0x89   : > { %2101 = shalt.err (!%p2098_p11)
}
  0x8a   : > { %s2102_s3 = scalar_lea.vmem %s318_s1, 256  ;;  %p2110_p0 = scmp.lt.s32.totalorder %s318_s1, %s318_s1 }
  0x8b   : > { %p2103_p3 = scmp.ne.s32.totalorder %s318_s1, %s2102_s3  ;;  %p2111_p8 = scmp.lt.s32.totalorder %s2102_s3, %s2102_s3 }
  0x8d   : > { %p2105_p6 = pnand %p2103_p3, %p3014_p7  ;;  %p2112_p2 = por %p2111_p8, %p2110_p0 }
  0x8f   : > { %p2106_p4 = pneg %p2105_p6 }
  0x91   : > { %p2113_p12 = pnand %p2112_p2, %p2106_p4 }
  0x93   : > { %2116 = shalt.err (!%p2113_p12)
}
  0x94   : > { %p3015_p1 = scmp.ne.s32.totalorder %s2997_s19, 0  ;;  %s2117_s28 = scalar_lea.hbm %s2954_s7, 256 }
  0x95   : > { %p2118_p9 = scmp.ne.s32.totalorder %s2954_s7, %s2117_s28  ;;  %p2124_p10 = scmp.lt.u32.totalorder %s2117_s28, %s2954_s7 }
  0x96   : > { %1851 = dma.hbm_to_vmem [thread:$0]  (!%p3015_p1), %s2951_s4, 256, %s318_s1, [#allocation10], %s3013_s17, %s3013_s17, %s3012_s24  }
  0x97   : > { %p2120_p12 = pnand %p2118_p9, %p3014_p7 }
  0x99   : > { %p2121_p5 = pneg %p2120_p12 }
  0x9b   : > { %p2126_p11 = pnand %p2124_p10, %p2121_p5 }
  0x9d   : > { %2129 = shalt.err (!%p2126_p11)
}
  0x9e   : > { %s2130_s14 = scalar_lea.vmem %s347_s18, 256  ;;  %p2138_p0 = scmp.lt.s32.totalorder %s347_s18, %s347_s18 }
  0x9f   : > { %p2131_p3 = scmp.ne.s32.totalorder %s347_s18, %s2130_s14  ;;  %p2139_p8 = scmp.lt.s32.totalorder %s2130_s14, %s2130_s14 }
  0xa1   : > { %p2133_p6 = pnand %p2131_p3, %p3014_p7  ;;  %p2140_p2 = por %p2139_p8, %p2138_p0 }
  0xa3   : > { %p2134_p4 = pneg %p2133_p6 }
  0xa5   : > { %p2141_p13 = pnand %p2140_p2, %p2134_p4 }
  0xa7   : > { %2144 = shalt.err (!%p2141_p13)
}
  0xa8   : > { %1857 = dma.hbm_to_vmem [thread:$0]  (!%p3015_p1), %s2954_s7, 256, %s347_s18, [#allocation13], %s3013_s17, %s3013_s17, %s3012_s24  }
  0xa9   : > { %s2340_s5 = smov [#allocation15]   ;;  %s2145_s28 = scalar_lea.hbm %s2955_s8, 256 }
  0xaa   : > { %s359_s30 = sshll.u32 %s2340_s5, 4  ;;  %p2146_p13 = scmp.ne.s32.totalorder %s2955_s8, %s2145_s28  ;;  %s360_s30 = int_to_ptr.vmem [resolvable:$true] %s359_s30 }
  0xab   : > { %p2152_p5 = scmp.lt.u32.totalorder %s2145_s28, %s2955_s8 }
  0xac   : > { %p2148_p9 = pnand %p2146_p13, %p3014_p7 }
  0xae   : > { %p2149_p12 = pneg %p2148_p9 }
  0xb0   : > { %p2154_p10 = pnand %p2152_p5, %p2149_p12 }
  0xb2   : > { %2157 = shalt.err (!%p2154_p10)
}
  0xb3   : > { %s2158_s18 = scalar_lea.vmem %s360_s30, 256  ;;  %p2166_p4 = scmp.lt.s32.totalorder %s360_s30, %s360_s30 }
  0xb4   : > { %p2159_p11 = scmp.ne.s32.totalorder %s360_s30, %s2158_s18  ;;  %p2167_p0 = scmp.lt.s32.totalorder %s2158_s18, %s2158_s18 }
  0xb6   : > { %p2161_p3 = pnand %p2159_p11, %p3014_p7  ;;  %p2168_p8 = por %p2167_p0, %p2166_p4 }
  0xb8   : > { %p2162_p6 = pneg %p2161_p3 }
  0xba   : > { %p2169_p2 = pnand %p2168_p8, %p2162_p6 }
  0xbc   : > { %2172 = shalt.err (!%p2169_p2)
}
  0xbd   : > { %1860 = dma.hbm_to_vmem [thread:$0]  (!%p3015_p1), %s2955_s8, 256, %s360_s30, [#allocation16], %s3013_s17, %s3013_s17, %s3012_s24  }
  0xbe   : > { %s2669_s5 = scalar_lea.hbm %s2947_s0, %s2553_s12  ;;  %s377_s19 = scalar_lea.vmem [#allocation3], %s2550_s9 }
  0xbf   : > { %s386_s15 = sshll.u32 %s377_s19, 4  ;;  %s3016_s22 = sand.u32 1, %s2319_s11   ;;  %s2672_s15 = int_to_ptr.vmem [resolvable:$true] %s386_s15 }
  0xc0   : > { %s2676_s28 = scalar_lea.sflag [#allocation4], %s3016_s22  ;;  %s2173_s29 = scalar_lea.hbm %s2669_s5, 128 }
  0xc1   : > { %p2174_p7 = scmp.ne.s32.totalorder %s2669_s5, %s2173_s29  ;;  %p3017_p13 = scmp.ne.s32.totalorder %s3011_s13, 0 }
  0xc2   : > { %s2178_s25 = scalar_lea.hbm %s2947_s0, 256  ;;  %p2179_p12 = scmp.lt.u32.totalorder %s2669_s5, %s2947_s0 }
  0xc3   : > { %p2176_p1 = pnand %p2174_p7, %p3017_p13  ;;  %p2180_p5 = scmp.lt.u32.totalorder %s2178_s25, %s2173_s29 }
  0xc4   : > { %p2182_p11 = scmp.lt.u32.totalorder %s2173_s29, %s2669_s5 }
  0xc5   : > { %p2177_p9 = pneg %p2176_p1  ;;  %p2181_p10 = por %p2180_p5, %p2179_p12 }
  0xc7   : > { %p2183_p3 = por %p2182_p11, %p2181_p10 }
  0xc9   : > { %p2184_p6 = pnand %p2183_p3, %p2177_p9 }
  0xcb   : > { %2187 = shalt.err (!%p2184_p6)
}
  0xcc   : > { %s2188_s14 = scalar_lea.vmem %s2672_s15, 128  ;;  %s2341_s1 = smov [#allocation3]  }
  0xcd   : > { %p2189_p4 = scmp.ne.s32.totalorder %s2672_s15, %s2188_s14  ;;  %s2193_s27 = sshll.u32 %s2341_s1, 4  ;;  %s2194_s27 = int_to_ptr.vmem [resolvable:$false] %s2193_s27 }
  0xce   : > { %s2195_s3 = scalar_lea.vmem %s2194_s27, 256  ;;  %p2196_p2 = scmp.lt.s32.totalorder %s2672_s15, %s2194_s27 }
  0xcf   : > { %p2191_p0 = pnand %p2189_p4, %p3017_p13  ;;  %p2197_p7 = scmp.lt.s32.totalorder %s2195_s3, %s2188_s14 }
  0xd1   : > { %p2192_p8 = pneg %p2191_p0  ;;  %p2198_p1 = por %p2197_p7, %p2196_p2 }
  0xd3   : > { %p2199_p12 = pnand %p2198_p1, %p2192_p8 }
  0xd5   : > { %2202 = shalt.err (!%p2199_p12)
}
  0xd6   : > { %p3018_p9 = scmp.ne.s32.totalorder %s3009_s20, 0  ;;  %s2707_s29 = scalar_lea.hbm %s2949_s2, %s2553_s12 }
  0xd7   : > { %s421_s30 = scalar_lea.vmem [#allocation8], %s2550_s9  ;;  %s2203_s25 = scalar_lea.hbm %s2707_s29, 128 }
  0xd8   : > { %1864 = dma.hbm_to_vmem [thread:$0]  (!%p3018_p9), %s2669_s5, 128, %s2672_s15, %s2676_s28, %s3013_s17, %s3013_s17, %s3012_s24  }
  0xd9   : > { %s430_s21 = sshll.u32 %s421_s30, 4  ;;  %p2204_p5 = scmp.ne.s32.totalorder %s2707_s29, %s2203_s25  ;;  %s2710_s21 = int_to_ptr.vmem [resolvable:$true] %s430_s21 }
  0xda   : > { %s2208_s15 = scalar_lea.hbm %s2949_s2, 256  ;;  %p2209_p3 = scmp.lt.u32.totalorder %s2707_s29, %s2949_s2 }
  0xdb   : > { %p2206_p10 = pnand %p2204_p5, %p3017_p13  ;;  %p2210_p6 = scmp.lt.u32.totalorder %s2208_s15, %s2203_s25 }
  0xdc   : > { %p2212_p0 = scmp.lt.u32.totalorder %s2203_s25, %s2707_s29 }
  0xdd   : > { %p2207_p11 = pneg %p2206_p10  ;;  %p2211_p4 = por %p2210_p6, %p2209_p3 }
  0xdf   : > { %p2213_p8 = por %p2212_p0, %p2211_p4 }
  0xe1   : > { %p2214_p2 = pnand %p2213_p8, %p2207_p11 }
  0xe3   : > { %2217 = shalt.err (!%p2214_p2)
}
  0xe4   : > { %s2218_s9 = scalar_lea.vmem %s2710_s21, 128  ;;  %s2342_s18 = smov [#allocation8]  }
  0xe5   : > { %p2219_p7 = scmp.ne.s32.totalorder %s2710_s21, %s2218_s9  ;;  %s2223_s14 = sshll.u32 %s2342_s18, 4  ;;  %s2224_s14 = int_to_ptr.vmem [resolvable:$false] %s2223_s14 }
  0xe6   : > { %s2225_s1 = scalar_lea.vmem %s2224_s14, 256  ;;  %p2226_p5 = scmp.lt.s32.totalorder %s2710_s21, %s2224_s14 }
  0xe7   : > { %p2221_p1 = pnand %p2219_p7, %p3017_p13  ;;  %p2227_p10 = scmp.lt.s32.totalorder %s2225_s1, %s2218_s9 }
  0xe9   : > { %p2222_p12 = pneg %p2221_p1  ;;  %p2228_p3 = por %p2227_p10, %p2226_p5 }
  0xeb   : > { %p2229_p6 = pnand %p2228_p3, %p2222_p12 }
  0xed   : > { %2232 = shalt.err (!%p2229_p6)
}
  0xee   : > { %1870 = dma.hbm_to_vmem [thread:$0]  (!%p3018_p9), %s2707_s29, 128, %s2710_s21, %s2569_s6, %s3013_s17, %s3013_s17, %s3012_s24  }
  0xef   : > { %p3019_p13 = scmp.ne.s32.totalorder %s2996_s16, 0 }
  0xf0   : > { %s2740_s13 = sand.u32 (!%p3019_p13), 1, %s2315_s10   ;;  %p3020_p11 = scmp.ne.s32.totalorder (!%p3019_p13), %s3002_s26, 0 }
  0xf1   : > { %442 = sbr.rel (%p3019_p13) target bundleno = 1589 (0x635), region = 56  ;;  %s2743_s27 = sshll.u32 (!%p3019_p13), %s2740_s13, 3 }
  0xf2   : > { %s445_s20 = scalar_lea.sflag (!%p3019_p13), [#allocation4], %s2740_s13  ;;  %s448_s3 = scalar_lea.vmem (!%p3019_p13), [#allocation3], %s2743_s27 }
  0xf8   : > { %2286 = dma.done.wait (%p3020_p11), %s445_s20, 128  }
  0xf9   : > { %2288 = vsyncadd (%p3020_p11), %s445_s20, 4294967168  ;;  %s3021_s6 = sld [smem:[#allocation28_spill]]  ;;  %s457_s17 = scalar_lea.vmem [#allocation6], %s2743_s27 }
  0xff   : > { %s453_s16 = sand.u32 1, %s3021_s6  }
 0x100   : > { %s454_s24 = scalar_lea.sflag [#allocation7], %s453_s16 }
 0x101   : > { %2290 = dma.done.wait (%p3020_p11), %s454_s24, 256  }
 0x102   : > { %2292 = vsyncadd (%p3020_p11), %s454_s24, 4294967040  ;;  %s466_s19 = scalar_lea.vmem [#allocation8], %s2743_s27  ;;  %p3022_p9 = scmp.eq.s32.totalorder %s3021_s6, 0 }
 0x104   : > { %2294 = dma.done.wait (%p3022_p9), [#allocation10], 768   ;;  %p3023_p4 = pmov %p3022_p9 }
 0x106   : > { %2296 = vsyncadd (%p3023_p4), [#allocation10], 4294966528  ;;  %p3024_p0 = pmov %p3023_p4 }
 0x108   : > { %2298 = dma.done.wait (%p3024_p0), [#allocation13], 512   ;;  %p3025_p8 = pmov %p3024_p0 }
 0x109   : > { %p3026_p2 = pmov %p3024_p0 }
 0x10a   : > { %2300 = vsyncadd (%p3025_p8), [#allocation13], 4294966784 }
 0x10b   : > { %2302 = dma.done.wait (%p3026_p2), [#allocation16], 256   ;;  %p3027_p7 = pmov %p3024_p0 }
 0x10c   : > { %v2343_v0 = vmov 0.0   ;;  %vm2344_vm0 = vmmov 0   ;;  %s3028_s29 = sld [smem:[#allocation35_spill]]  ;;  %v1952_v2 = vld [vmem:[#allocation11] sm:$0xff]   ;;  %v1955_v4 = vld [vmem:[#allocation11 + $0x8] sm:$0xff]   ;;  %vm565_vm1 = vcmask 261120  }
 0x10d   : > { %2304 = vsyncadd (%p3027_p7), [#allocation16], 4294967040  ;;  %1737 = vmatprep.subr.bf16.mxu1 %v2343_v0  ;;  %1729 = vmatprep.subr.bf16.mxu0 %v2343_v0  ;;  %v1954_v5 = vld [vmem:[%s457_s17] sm:$0xff]   ;;  %v1956_v6 = vld [vmem:[%s448_s3] sm:$0xff]   ;;  %vm804_vm2 = vcmask 64512   ;;  %s2345_s25 = smov 112  }
 0x10e   : > { %1741 = vmatprep.mubr.msk.bf16.mxu1 %vm2344_vm0, %v2343_v0  ;;  %1733 = vmatprep.mubr.msk.bf16.mxu0 %vm2344_vm0, %v2343_v0  ;;  %v1957_v7 = vld [vmem:[#allocation12] sm:$0xff]   ;;  %v1958_v8 = vld [vmem:[#allocation12 + $0x8] sm:$0xff]   ;;  %s2346_s23 = smov 120   ;;  %s2347_s5 = smov 104   ;;  %v1959_v25 = vld [vmem:[#allocation14] sm:$0xff]   ;;  %vm858_vm3 = vcmask 130048  }
 0x10f   : > { %1730 = vmatpush3.bf16.msra.mxu0 %v1952_v2  ;;  %v1960_v26 = vld [vmem:[#allocation14 + $0x8] sm:$0xff]   ;;  %v1679_v36 = vld [vmem:[%s466_s19] sm:$0xff]   ;;  %v1683_v37 = vld [vmem:[#allocation9] sm:$0xff]   ;;  %s2348_s15 = smov 8   ;;  %s2349_s28 = smov 16   ;;  %vm1067_vm4 = vcmask 130112  }
 0x110   : > { %1731 = vmatprep.subr.bf16.mxu0 %v2343_v0  ;;  %v1680_v38 = vunpack.c.l.bf16 %v1679_v36  ;;  %v1681_v39 = vunpack.c.h.bf16 %v1679_v36  ;;  %v1684_v40 = vunpack.c.l.bf16 %v1683_v37  ;;  %v1685_v44 = vunpack.c.h.bf16 %v1683_v37  ;;  %v1687_v52 = vld [vmem:[#allocation9 + $0x8] sm:$0xff]   ;;  %v1691_v62 = vld [vmem:[#allocation9 + $0x10] sm:$0xff]   ;;  %s2350_s12 = smov 24   ;;  %s3029_s9 = sld [smem:[#allocation25_spill]] }
 0x111   : > { %v1688_v53 = vunpack.c.l.bf16 %v1687_v52  ;;  %v1689_v57 = vunpack.c.h.bf16 %v1687_v52  ;;  %v1692_v2 = vunpack.c.l.bf16 %v1691_v62  ;;  %vm1206_vm5 = vcmask 195712   ;;  %s3030_s18 = sld [smem:[#allocation30_spill]]  ;;  %s1641_s14 = sshll.u32 %s2740_s13, 4 }
 0x112   : > { %v1951_v1 = vld [vmem:[%s3028_s29] sm:$0xff]   ;;  %v1953_v3 = vld [vmem:[%s3028_s29 + $0x8] sm:$0xff]   ;;  %vm1345_vm6 = vcmask 261312   ;;  %s530_s1 = scalar_lea.vmem [#allocation17], %s1641_s14  ;;  %s3031_s16 = sld [smem:[#allocation37_spill]] }
 0x113   : > { %1738 = vmatpush3.bf16.msra.mxu1 %v1951_v1  ;;  %1732 = vmatpush3.bf16.msra.mxu0 %v1955_v4  ;;  %s1431_s27 = sshll.u32 %s530_s1, 4  ;;  %s1416_s17 = scalar_lea.sflag [#allocation5], %s2740_s13  ;;  %s2892_s27 = int_to_ptr.vmem [resolvable:$true] %s1431_s27 }
 0x114   : > { %1739 = vmatprep.subr.bf16.mxu1 %v2343_v0  ;;  %1745 = vmatprep.subr.bf16.mxu0 %v2343_v0  ;;  %s2233_s19 = scalar_lea.vmem %s2892_s27, 256  ;;  %s2351_s26 = smov [#allocation17]  }
 0x115   : > { %p2234_p1 = scmp.ne.s32.totalorder %s2892_s27, %s2233_s19  ;;  %s2237_s22 = sshll.u32 %s2351_s26, 4  ;;  %s2238_s22 = int_to_ptr.vmem [resolvable:$false] %s2237_s22 }
 0x116   : > { %1734 = vmatmul.mubr.msk.bf16.vlgmr.msra.gmra.mrb[0].mxu0 %vm565_vm1, %v1956_v6  ;;  %s1677_s20 = sshll.u32 %s3029_s9, 8  ;;  %s2239_s30 = scalar_lea.vmem %s2238_s22, 512 }
 0x117   : > { %1740 = vmatpush3.bf16.msra.mxu1 %v1953_v3  ;;  %1746 = vmatpush3.bf16.msra.mxu0 %v1957_v7  ;;  %v1693_v7 = vunpack.c.h.bf16 %v1691_v62  ;;  %p3032_p12 = scmp.ne.s32.totalorder %s3030_s18, 0  ;;  %p2240_p3 = scmp.lt.s32.totalorder %s2892_s27, %s2238_s22 }
 0x118   : > { %1753 = vmatprep.subr.bf16.mxu1 %v2343_v0  ;;  %1749 = vmatprep.mubr.msk.bf16.mxu0 %vm2344_vm0, %v2343_v0  ;;  %s2897_s24 = scalar_lea.hbm %s3031_s16, %s1677_s20  ;;  %p2241_p6 = scmp.lt.s32.totalorder %s2239_s30, %s2233_s19 }
 0x119   : > { %1747 = vmatprep.subr.bf16.mxu0 %v2343_v0  ;;  %p2235_p5 = pnand %p2234_p1, %p3032_p12 }
 0x11a   : > { %1742 = vmatmul.mubr.msk.bf16.vlgmr.msra.gmra.mrb[0].mxu1 %vm565_vm1, %v1954_v5  ;;  %p2242_p13 = por %p2241_p6, %p2240_p3 }
 0x11b   : > { %1757 = vmatprep.mubr.msk.bf16.mxu1 %vm2344_vm0, %v2343_v0  ;;  %1748 = vmatpush3.bf16.msra.mxu0 %v1958_v8  ;;  %p2236_p10 = pneg %p2235_p5 }
 0x11c   : > { %1761 = vmatprep.subr.bf16.mxu0 %v2343_v0  ;;  %1754 = vmatpush3.bf16.msra.mxu1 %v1959_v25 }
 0x11d   : > { %1755 = vmatprep.subr.bf16.mxu1 %v2343_v0  ;;  %p2243_p11 = pnand %p2242_p13, %p2236_p10 }
 0x11e   : > { %1750 = vmatmul.mubr.msk.bf16.vlgmr.msra.gmra.mrb[4].mxu0 %vm565_vm1, %v1954_v5 }
 0x11f   : > { %1763 = vmatprep.mubr.msk.bf16.mxu0 %vm2344_vm0, %v2343_v0 }
 0x120   : > { %1756 = vmatpush3.bf16.msra.mxu1 %v1960_v26 }
 0x121   : > { %1767 = vmatprep.subr.bf16.mxu1 %v2343_v0 }
 0x123   : > { %1758 = vmatmul.mubr.msk.bf16.vlgmr.msra.gmra.mrb[4].mxu1 %vm565_vm1, %v1956_v6 }
 0x124   : > { %1769 = vmatprep.mubr.msk.bf16.mxu1 %vm2344_vm0, %v2343_v0 }
 0x1e9   : > { %v603_v11 = vpop.f32.mrb[0].mxu0 }
 0x1ea   : > { %v1735_v13 = vpop.f32.mrb[1].mxu0 }
 0x1eb   : > { %v606_v16 = vpop.f32.mrb[2].mxu0 }
 0x1ec   : > { %v610_v17 = vpack.c.bf16 %v606_v16, %v603_v11  ;;  %v1736_v18 = vpop.f32.mrb[3].mxu0 }
 0x1ed   : > { %v669_v9 = vpop.f32.mrb[0].mxu1 }
 0x1ee   : > { %v1743_v10 = vpop.f32.mrb[1].mxu1 }
 0x1ef   : > { %v672_v12 = vpop.f32.mrb[2].mxu1 }
 0x1f0   : > { %v676_v14 = vpack.c.bf16 %v672_v12, %v669_v9  ;;  %v1744_v15 = vpop.f32.mrb[3].mxu1  ;;  %v1695_v12 = vld [vmem:[#allocation9 + $0x18] sm:$0xff]  }
 0x1f1   : > { %v727_v20 = vpop.f32.mrb[4].mxu0  ;;  %v1696_v16 = vunpack.c.l.bf16 %v1695_v12 }
 0x1f2   : > { %1072 = vrot.lane.b32.xlu1 %v676_v14, %s2345_s25  ;;  %932 = vrot.lane.b32.xlu0 %v676_v14, %s2346_s23  ;;  %v809_v19 = vsel %vm804_vm2, %v676_v14, 0  ;;  %v1751_v21 = vpop.f32.mrb[5].mxu0 }
 0x1f3   : > { %1762 = vmatpush3.bf16.xpose.msra.mxu0 %v809_v19  ;;  %v730_v22 = vpop.f32.mrb[6].mxu0 }
 0x1f4   : > { %1773 = vmatprep.subr.bf16.mxu0 %v2343_v0  ;;  %v2810_v23 = vpack.c.bf16 %v730_v22, %v727_v20  ;;  %v1752_v24 = vpop.f32.mrb[7].mxu0  ;;  %v1697_v20 = vunpack.c.h.bf16 %v1695_v12 }
 0x1f6   : > { %1070 = vrot.lane.b32.xlu1 %v610_v17, %s2345_s25  ;;  %929 = vrot.lane.b32.xlu0 %v610_v17, %s2346_s23 }
 0x1f7   : > { %1768 = vmatpush3.bf16.msra.mxu1 %v2810_v23 }
 0x1f8   : > { %1779 = vmatprep.subr.bf16.mxu1 %v2343_v0 }
 0x1fa   : > { %1209 = vrot.lane.b32.xlu1 %v610_v17, %s2347_s5  ;;  %1211 = vrot.lane.b32.xlu0 %v676_v14, %s2347_s5 }
 0x1fb   : > { %1764 = vmatmul.mubr.msk.bf16.vlgmr.msra.gmra.mrb[8].mxu0 %vm804_vm2, %v610_v17 }
 0x1fc   : > { %1775 = vmatprep.mubr.msk.bf16.mxu0 %vm2344_vm0, %v2343_v0 }
 0x264   : > { %v933_v27 = vpop.permute.xlu0 %932  ;;  %v1073_v29 = vpop.permute.xlu1 %1072 }
 0x265   : > { %v938_v28 = vsel %vm804_vm2, %v933_v27, 0  ;;  %v1078_v31 = vsel %vm804_vm2, %v1073_v29, 0 }
 0x266   : > { %1774 = vmatpush3.bf16.xpose.msra.mxu0 %v938_v28 }
 0x267   : > { %1785 = vmatprep.subr.bf16.mxu0 %v2343_v0 }
 0x268   : > { %v930_v30 = vpop.permute.xlu0 %929  ;;  %v1071_v33 = vpop.permute.xlu1 %1070 }
 0x26c   : > { %v1212_v32 = vpop.permute.xlu0 %1211  ;;  %v1210_v35 = vpop.permute.xlu1 %1209 }
 0x26d   : > { %1776 = vmatmul.mubr.msk.bf16.vlgmr.msra.gmra.mrb[12].mxu0 %vm804_vm2, %v930_v30  ;;  %v1217_v34 = vsel %vm804_vm2, %v1212_v32, 0 }
 0x26e   : > { %1786 = vmatpush3.bf16.xpose.msra.mxu0 %v1078_v31  ;;  %1787 = vmatprep.mubr.msk.bf16.mxu0 %vm2344_vm0, %v2343_v0 }
 0x26f   : > { %1797 = vmatprep.subr.bf16.mxu0 %v2343_v0 }
 0x275   : > { %1788 = vmatmul.mubr.msk.bf16.vlgmr.msra.gmra.mrb[16].mxu0 %vm804_vm2, %v1071_v33 }
 0x276   : > { %1798 = vmatpush3.bf16.xpose.msra.mxu0 %v1217_v34  ;;  %1799 = vmatprep.mubr.msk.bf16.mxu0 %vm2344_vm0, %v2343_v0 }
 0x277   : > { %1809 = vmatprep.subr.bf16.mxu0 %v2343_v0 }
 0x27d   : > { %1800 = vmatmul.mubr.msk.bf16.vlgmr.msra.gmra.mrb[20].mxu0 %vm804_vm2, %v1210_v35 }
 0x27e   : > { %1813 = vmatprep.mubr.msk.bf16.mxu0 %vm2344_vm0, %v2343_v0 }
 0x2ce   : > { %v845_v41 = vpop.f32.mrb[8].mxu0 }
 0x2cf   : > { %v846_v42 = vadd.f32 %v1680_v38, %v845_v41  ;;  %v1765_v43 = vpop.f32.mrb[9].mxu0 }
 0x2d0   : > { %v848_v45 = vpop.f32.mrb[10].mxu0 }
 0x2d1   : > { %v849_v46 = vadd.f32 %v1681_v39, %v848_v45  ;;  %v1766_v47 = vpop.f32.mrb[11].mxu0  ;;  %v856_v48 = vadd.f32 %v1684_v40, %v846_v42 }
 0x2d3   : > { %v859_v49 = vsel %vm858_vm3, %v856_v48, -inf  ;;  %v857_v50 = vadd.f32 %v1685_v44, %v849_v46 }
 0x2d4   : > { %860 = vmax.xlane.f32.xlu0 %v859_v49 }
 0x2d5   : > { %v862_v51 = vsel %vm858_vm3, %v857_v50, -inf }
 0x2d6   : > { %863 = vmax.xlane.f32.xlu1 %v862_v51 }
 0x2e7   : > { %1010 = vrot.lane.b32.xlu1 %v2810_v23, %s2346_s23 }
 0x340   : > { %v974_v54 = vpop.f32.mrb[12].mxu0 }
 0x341   : > { %v975_v55 = vadd.f32 %v1680_v38, %v974_v54  ;;  %v1777_v56 = vpop.f32.mrb[13].mxu0 }
 0x342   : > { %v977_v58 = vpop.f32.mrb[14].mxu0 }
 0x343   : > { %v978_v59 = vadd.f32 %v1681_v39, %v977_v58  ;;  %v1778_v60 = vpop.f32.mrb[15].mxu0  ;;  %v986_v61 = vadd.f32 %v1688_v53, %v975_v55 }
 0x345   : > { %v988_v63 = vsel %vm858_vm3, %v986_v61, -inf  ;;  %v987_v1 = vadd.f32 %v1689_v57, %v978_v59 }
 0x346   : > { %989 = vmax.xlane.f32.xlu0 %v988_v63 }
 0x347   : > { %v991_v6 = vsel %vm858_vm3, %v987_v1, -inf }
 0x348   : > { %v1114_v3 = vpop.f32.mrb[16].mxu0 }
 0x349   : > { %v1115_v4 = vadd.f32 %v1680_v38, %v1114_v3  ;;  %v1789_v5 = vpop.f32.mrb[17].mxu0 }
 0x34a   : > { %992 = vmax.xlane.f32.xlu0 %v991_v6  ;;  %v1117_v8 = vpop.f32.mrb[18].mxu0 }
 0x34b   : > { %v1118_v9 = vadd.f32 %v1681_v39, %v1117_v8  ;;  %v1790_v10 = vpop.f32.mrb[19].mxu0  ;;  %v1126_v11 = vadd.f32 %v1692_v2, %v1115_v4 }
 0x34d   : > { %v1128_v13 = vsel %vm858_vm3, %v1126_v11, -inf  ;;  %v1127_v14 = vadd.f32 %v1693_v7, %v1118_v9 }
 0x34e   : > { %1129 = vmax.xlane.f32.xlu1 %v1128_v13 }
 0x34f   : > { %v1131_v15 = vsel %vm858_vm3, %v1127_v14, -inf }
 0x350   : > { %1132 = vmax.xlane.f32.xlu0 %v1131_v15  ;;  %v1253_v17 = vpop.f32.mrb[20].mxu0 }
 0x351   : > { %v1254_v18 = vadd.f32 %v1680_v38, %v1253_v17  ;;  %v1801_v19 = vpop.f32.mrb[21].mxu0 }
 0x352   : > { %v1256_v21 = vpop.f32.mrb[22].mxu0 }
 0x353   : > { %v1257_v22 = vadd.f32 %v1681_v39, %v1256_v21  ;;  %v1802_v24 = vpop.f32.mrb[23].mxu0  ;;  %v1265_v25 = vadd.f32 %v1696_v16, %v1254_v18  ;;  %v2860_v39 = vpop.f32.mrb[4].mxu1 }
 0x354   : > { %v1759_v40 = vpop.f32.mrb[5].mxu1 }
 0x355   : > { %v1267_v26 = vsel %vm858_vm3, %v1265_v25, -inf  ;;  %v1266_v27 = vadd.f32 %v1697_v20, %v1257_v22 }
 0x356   : > { %1268 = vmax.xlane.f32.xlu1 %v1267_v26 }
 0x357   : > { %v1270_v28 = vsel %vm858_vm3, %v1266_v27, -inf }
 0x358   : > { %1271 = vmax.xlane.f32.xlu0 %v1270_v28 }
 0x361   : > { %v861_v29 = vpop.xlane.xlu0 %860 }
 0x362   : > { %v865_v30 = vsub.f32 %v856_v48, %v861_v29 }
 0x363   : > { %v864_v31 = vpop.xlane.xlu1 %863 }
 0x364   : > { %v867_v32 = vmul.f32 1.442695, %v865_v30  ;;  %v866_v33 = vsub.f32 %v857_v50, %v864_v31 }
 0x366   : > { %v869_v34 = vmul.f32 1.442695, %v866_v33  ;;  %1963 = vpow2.f32 %v867_v32 }
 0x367   : > { %1288 = vrot.lane.b32.xlu1 %v2810_v23, %s2347_s5  ;;  %v1011_v38 = vpop.permute.xlu1 %1010 }
 0x368   : > { %1965 = vpow2.f32 %v869_v34 }
 0x36e   : > { %1149 = vrot.lane.b32.xlu0 %v2810_v23, %s2345_s25  ;;  %v2862_v23 = vpop.f32.mrb[6].mxu1 }
 0x36f   : > { %v1760_v41 = vpop.f32.mrb[7].mxu1 }
 0x370   : > { %v2850_v35 = vpop.eup %1963 }
 0x371   : > { %v871_v13 = vsel %vm858_vm3, %v2850_v35, 0.0 }
 0x372   : > { %v2852_v36 = vpop.eup %1965 }
 0x373   : > { %v879_v37 = vpack.c.bf16 %v2852_v36, %v2850_v35  ;;  %v874_v15 = vsel %vm858_vm3, %v2852_v36, 0.0 }
 0x375   : > { %1770 = vmatmul.mubr.msk.bf16.vlgmr.msra.gmra.mrb[8].mxu1 %vm858_vm3, %v879_v37 }
 0x376   : > { %1780 = vmatpush3.bf16.msra.mxu1 %v1011_v38  ;;  %1781 = vmatprep.mubr.msk.bf16.mxu1 %vm2344_vm0, %v2343_v0 }
 0x377   : > { %1791 = vmatprep.subr.bf16.mxu1 %v2343_v0 }
 0x3d3   : > { %v990_v42 = vpop.xlane.xlu0 %989 }
 0x3d4   : > { %v994_v43 = vsub.f32 %v986_v61, %v990_v42 }
 0x3d6   : > { %v996_v44 = vmul.f32 1.442695, %v994_v43 }
 0x3d7   : > { %v993_v45 = vpop.xlane.xlu0 %992 }
 0x3d8   : > { %1967 = vpow2.f32 %v996_v44  ;;  %v995_v46 = vsub.f32 %v987_v1, %v993_v45  ;;  %v1961_v44 = vld [vmem:[#allocation15] sm:$0xff]  }
 0x3d9   : > { %1810 = vmatpush3.bf16.msra.mxu0 %v1961_v44 }
 0x3da   : > { %v998_v47 = vmul.f32 1.442695, %v995_v46  ;;  %1811 = vmatprep.subr.bf16.mxu0 %v2343_v0 }
 0x3db   : > { %v1130_v48 = vpop.xlane.xlu1 %1129 }
 0x3dc   : > { %1969 = vpow2.f32 %v998_v47  ;;  %v1134_v49 = vsub.f32 %v1126_v11, %v1130_v48 }
 0x3dd   : > { %v1133_v50 = vpop.xlane.xlu0 %1132 }
 0x3de   : > { %v1136_v51 = vmul.f32 1.442695, %v1134_v49  ;;  %v1135_v52 = vsub.f32 %v1127_v14, %v1133_v50  ;;  %v1962_v49 = vld [vmem:[#allocation15 + $0x8] sm:$0xff]  }
 0x3df   : > { %1812 = vmatpush3.bf16.msra.mxu0 %v1962_v49 }
 0x3e0   : > { %1971 = vpow2.f32 %v1136_v51  ;;  %v1138_v53 = vmul.f32 1.442695, %v1135_v52 }
 0x3e2   : > { %v1968_v54 = vpop.eup %1967  ;;  %1973 = vpow2.f32 %v1138_v53 }
 0x3e3   : > { %v1269_v55 = vpop.xlane.xlu1 %1268  ;;  %v1000_v56 = vsel %vm858_vm3, %v1968_v54, 0.0 }
 0x3e4   : > { %v1273_v57 = vsub.f32 %v1265_v25, %v1269_v55  ;;  %1001 = vadd.xlane.f32.xlu1 %v1000_v56 }
 0x3e5   : > { %v1272_v58 = vpop.xlane.xlu0 %1271 }
 0x3e6   : > { %v1970_v59 = vpop.eup %1969  ;;  %v1275_v60 = vmul.f32 1.442695, %v1273_v57  ;;  %v1274_v61 = vsub.f32 %v1266_v27, %v1272_v58 }
 0x3e7   : > { %v1003_v62 = vsel %vm858_vm3, %v1970_v59, 0.0  ;;  %v1008_v63 = vpack.c.bf16 %v1970_v59, %v1968_v54  ;;  %v1289_v8 = vpop.permute.xlu1 %1288 }
 0x3e8   : > { %1975 = vpow2.f32 %v1275_v60  ;;  %v1277_v1 = vmul.f32 1.442695, %v1274_v61  ;;  %1004 = vadd.xlane.f32.xlu0 %v1003_v62  ;;  %v1656_v60 = vmul.f32 -1.442695, %v2860_v39  ;;  %v1657_v61 = vmul.f32 -1.442695, %v2862_v23 }
 0x3e9   : > { %1782 = vmatmul.mubr.msk.bf16.vlgmr.msra.gmra.mrb[12].mxu1 %vm858_vm3, %v1008_v63  ;;  %v1150_v2 = vpop.permute.xlu0 %1149 }
 0x3ea   : > { %v1972_v3 = vpop.eup %1971  ;;  %1977 = vpow2.f32 %v1277_v1  ;;  %1792 = vmatpush3.bf16.msra.mxu1 %v1150_v2  ;;  %1793 = vmatprep.mubr.msk.bf16.mxu1 %vm2344_vm0, %v2343_v0 }
 0x3eb   : > { %v1140_v4 = vsel %vm858_vm3, %v1972_v3, 0.0  ;;  %1803 = vmatprep.subr.bf16.mxu1 %v2343_v0 }
 0x3ec   : > { %v1974_v5 = vpop.eup %1973  ;;  %1141 = vadd.xlane.f32.xlu0 %v1140_v4 }
 0x3ed   : > { %v1143_v6 = vsel %vm858_vm3, %v1974_v5, 0.0  ;;  %v1148_v7 = vpack.c.bf16 %v1974_v5, %v1972_v3 }
 0x3ee   : > { %1144 = vadd.xlane.f32.xlu1 %v1143_v6 }
 0x3f1   : > { %1794 = vmatmul.mubr.msk.bf16.vlgmr.msra.gmra.mrb[16].mxu1 %vm858_vm3, %v1148_v7 }
 0x3f2   : > { %v1976_v9 = vpop.eup %1975  ;;  %1804 = vmatpush3.bf16.msra.mxu1 %v1289_v8  ;;  %1805 = vmatprep.mubr.msk.bf16.mxu1 %vm2344_vm0, %v2343_v0 }
 0x3f3   : > { %v1279_v10 = vsel %vm858_vm3, %v1976_v9, 0.0 }
 0x3f4   : > { %v1978_v11 = vpop.eup %1977  ;;  %1280 = vadd.xlane.f32.xlu0 %v1279_v10 }
 0x3f5   : > { %v1282_v12 = vsel %vm858_vm3, %v1978_v11, 0.0  ;;  %v1287_v14 = vpack.c.bf16 %v1978_v11, %v1976_v9 }
 0x3f6   : > { %1283 = vadd.xlane.f32.xlu1 %v1282_v12 }
 0x3f8   : > { %872 = vadd.xlane.f32.xlu0 %v871_v13 }
 0x3f9   : > { %1806 = vmatmul.mubr.msk.bf16.vlgmr.msra.gmra.mrb[20].mxu1 %vm858_vm3, %v1287_v14 }
 0x3fa   : > { %875 = vadd.xlane.f32.xlu1 %v874_v15 }
 0x448   : > { %v917_v16 = vpop.f32.mrb[8].mxu1 }
 0x449   : > { %v1771_v17 = vpop.f32.mrb[9].mxu1 }
 0x44a   : > { %v920_v18 = vpop.f32.mrb[10].mxu1 }
 0x44b   : > { %v1772_v19 = vpop.f32.mrb[11].mxu1 }
 0x471   : > { %v1002_v21 = vpop.xlane.xlu1 %1001 }
 0x475   : > { %v1005_v20 = vpop.xlane.xlu0 %1004 }
 0x479   : > { %v1142_v22 = vpop.xlane.xlu0 %1141 }
 0x47b   : > { %v1145_v24 = vpop.xlane.xlu1 %1144 }
 0x481   : > { %v1281_v25 = vpop.xlane.xlu0 %1280 }
 0x483   : > { %v1284_v26 = vpop.xlane.xlu1 %1283 }
 0x485   : > { %v873_v27 = vpop.xlane.xlu0 %872 }
 0x486   : > { %1979 = vrcp.f32 %v873_v27 }
 0x487   : > { %v876_v28 = vpop.xlane.xlu1 %875 }
 0x488   : > { %1981 = vrcp.f32 %v876_v28 }
 0x489   : > { %1983 = vrcp.f32 %v1002_v21 }
 0x48a   : > { %1985 = vrcp.f32 %v1005_v20 }
 0x48b   : > { %1987 = vrcp.f32 %v1142_v22 }
 0x48c   : > { %1989 = vrcp.f32 %v1145_v24 }
 0x48d   : > { %1991 = vrcp.f32 %v1281_v25 }
 0x48e   : > { %1993 = vrcp.f32 %v1284_v26 }
 0x48f   : > { %1995 = vpow2.f32 %v1656_v60 }
 0x490   : > { %v1980_v29 = vpop.eup %1979  ;;  %1997 = vpow2.f32 %v1657_v61 }
 0x491   : > { %v924_v30 = vmul.f32 %v1980_v29, %v917_v16 }
 0x492   : > { %v1982_v31 = vpop.eup %1981 }
 0x493   : > { %926 = vst.msk [vmem:[#allocation2] sm:$0xff] %vm804_vm2, %v924_v30  ;;  %v925_v32 = vmul.f32 %v1982_v31, %v920_v18  ;;  %v1984_v33 = vpop.eup %1983 }
 0x494   : > { %v1986_v37 = vpop.eup %1985 }
 0x495   : > { %927 = vst.msk [vmem:[#allocation2 + $0x8] sm:$0xff] %vm804_vm2, %v925_v32  ;;  %v1988_v42 = vpop.eup %1987 }
 0x496   : > { %v1990_v47 = vpop.eup %1989 }
 0x497   : > { %v1992_v52 = vpop.eup %1991 }
 0x498   : > { %v1994_v56 = vpop.eup %1993 }
 0x499   : > { %v1996_v63 = vpop.eup %1995 }
 0x49a   : > { %v1998_v2 = vpop.eup %1997  ;;  %v798_v4 = vadd.f32 1.0, %v1996_v63 }
 0x49b   : > { %v799_v5 = vadd.f32 1.0, %v1998_v2 }
 0x49c   : > { %1999 = vrcp.f32 %v798_v4 }
 0x49d   : > { %2001 = vrcp.f32 %v799_v5 }
 0x4a6   : > { %v2000_v7 = vpop.eup %1999 }
 0x4a7   : > { %v2002_v8 = vpop.eup %2001 }
 0x4bc   : > { %v1050_v34 = vpop.f32.mrb[12].mxu1 }
 0x4bd   : > { %v1057_v35 = vmul.f32 %v1984_v33, %v1050_v34  ;;  %v1783_v36 = vpop.f32.mrb[13].mxu1 }
 0x4be   : > { %v1053_v38 = vpop.f32.mrb[14].mxu1 }
 0x4bf   : > { %v1058_v40 = vmul.f32 %v1986_v37, %v1053_v38  ;;  %v1784_v41 = vpop.f32.mrb[15].mxu1  ;;  %1061 = vrot.lane.b32.xlu0 %v1057_v35, %s2348_s15 }
 0x4c1   : > { %1063 = vrot.lane.b32.xlu1 %v1058_v40, %s2348_s15 }
 0x4c4   : > { %v1189_v43 = vpop.f32.mrb[16].mxu1 }
 0x4c5   : > { %v1196_v45 = vmul.f32 %v1988_v42, %v1189_v43  ;;  %v1795_v46 = vpop.f32.mrb[17].mxu1 }
 0x4c6   : > { %v1192_v48 = vpop.f32.mrb[18].mxu1 }
 0x4c7   : > { %v1197_v50 = vmul.f32 %v1990_v47, %v1192_v48  ;;  %v1796_v51 = vpop.f32.mrb[19].mxu1  ;;  %1200 = vrot.lane.b32.xlu1 %v1196_v45, %s2349_s28 }
 0x4c9   : > { %1202 = vrot.lane.b32.xlu0 %v1197_v50, %s2349_s28 }
 0x4cc   : > { %v1328_v53 = vpop.f32.mrb[20].mxu1 }
 0x4cd   : > { %v1335_v54 = vmul.f32 %v1992_v52, %v1328_v53  ;;  %v1807_v55 = vpop.f32.mrb[21].mxu1 }
 0x4ce   : > { %v1331_v57 = vpop.f32.mrb[22].mxu1 }
 0x4cf   : > { %v1336_v58 = vmul.f32 %v1994_v56, %v1331_v57  ;;  %v1808_v59 = vpop.f32.mrb[23].mxu1  ;;  %1339 = vrot.lane.b32.xlu1 %v1335_v54, %s2350_s12 }
 0x4d1   : > { %1341 = vrot.lane.b32.xlu0 %v1336_v58, %s2350_s12 }
 0x531   : > { %v1062_v0 = vpop.permute.xlu0 %1061 }
 0x532   : > { %1068 = vst.msk [vmem:[#allocation2] sm:$0xff] %vm1067_vm4, %v1062_v0 }
 0x533   : > { %v1064_v62 = vpop.permute.xlu1 %1063 }
 0x534   : > { %1069 = vst.msk [vmem:[#allocation2 + $0x8] sm:$0xff] %vm1067_vm4, %v1064_v62 }
 0x539   : > { %v1201_v1 = vpop.permute.xlu1 %1200 }
 0x53a   : > { %1207 = vst.msk [vmem:[#allocation2] sm:$0xff] %vm1206_vm5, %v1201_v1 }
 0x53b   : > { %v1203_v3 = vpop.permute.xlu0 %1202 }
 0x53c   : > { %1208 = vst.msk [vmem:[#allocation2 + $0x8] sm:$0xff] %vm1206_vm5, %v1203_v3 }
 0x541   : > { %v1340_v39 = vpop.permute.xlu1 %1339 }
 0x542   : > { %1346 = vst.msk [vmem:[#allocation2] sm:$0xff] %vm1345_vm6, %v1340_v39 }
 0x543   : > { %v1342_v23 = vpop.permute.xlu0 %1341 }
 0x544   : > { %1347 = vst.msk [vmem:[#allocation2 + $0x8] sm:$0xff] %vm1345_vm6, %v1342_v23 }
 0x549   : > { %v1348_v6 = vld [vmem:[#allocation2] sm:$0xff] }
 0x54a   : > { %v1350_v10 = vmul.f32 %v2000_v7, %v1348_v6 }
 0x54b   : > { %v1349_v9 = vld [vmem:[#allocation2 + $0x8] sm:$0xff] }
 0x54c   : > { %v1351_v11 = vmul.f32 %v2002_v8, %v1349_v9 }
 0x54e   : > { %v1352_v12 = vpack.c.bf16 %v1351_v11, %v1350_v10 }
 0x550   : > { %1814 = vmatmul.mubr.msk.bf16.vlgmr.msra.gmra.mrb[24].mxu0 %vm565_vm1, %v1352_v12 }
 0x623   : > { %v1406_v13 = vpop.f32.mrb[24].mxu0 }
 0x624   : > { %1413 = vst [vmem:[%s530_s1] sm:$0xff] %v1406_v13  ;;  %v1815_v14 = vpop.f32.mrb[25].mxu0 }
 0x625   : > { %v1409_v15 = vpop.f32.mrb[26].mxu0 }
 0x626   : > { %1414 = vst [vmem:[%s530_s1 + $0x8] sm:$0xff] %v1409_v15  ;;  %v1816_v16 = vpop.f32.mrb[27].mxu0 }
 0x627   : > { %2246 = shalt.err (!%p2243_p11)
}
 0x628   : > { %s2247_s21 = scalar_lea.hbm %s2897_s24, 256  ;;  %s2251_s5 = scalar_lea.hbm %s3031_s16, 512 }
 0x629   : > { %p2248_p9 = scmp.ne.s32.totalorder %s2897_s24, %s2247_s21  ;;  %p2252_p8 = scmp.lt.u32.totalorder %s2897_s24, %s3031_s16 }
 0x62a   : > { %p2253_p2 = scmp.lt.u32.totalorder %s2251_s5, %s2247_s21  ;;  %p2255_p1 = scmp.lt.u32.totalorder %s2247_s21, %s2897_s24 }
 0x62b   : > { %p2249_p4 = pnand %p2248_p9, %p3032_p12 }
 0x62c   : > { %p2254_p7 = por %p2253_p2, %p2252_p8 }
 0x62d   : > { %p2250_p0 = pneg %p2249_p4 }
 0x62e   : > { %p2256_p5 = por %p2255_p1, %p2254_p7 }
 0x630   : > { %p2257_p10 = pnand %p2256_p5, %p2250_p0 }
 0x632   : > { %2260 = shalt.err (!%p2257_p10)
}
 0x633   : > { %s2352_s9 = smov 128  }
 0x634   : > { %1843 = dma.vmem_to_hbm [thread:$0]  (%p3032_p12), %s2892_s27, 256, %s2897_s24, %s1416_s17, %s2352_s9, %s2352_s9, %s2348_s15  }
 0x635 PF: > { %s3033_s14 = sld [smem:[#allocation24_spill]]  ;;  %s3034_s1 = sld [smem:[#allocation32_spill]] }
 0x636   : > { %s3035_s20 = sld [smem:[#allocation27_spill]] }
 0x63b   : > { %s1446_s3 = sand.u32 1, %s3033_s14   ;;  %p3036_p3 = scmp.ne.s32.totalorder %s3034_s1, 0 }
 0x63c   : > { %p3037_p6 = scmp.ge.s32.totalorder %s3035_s20, 2  ;;  %s1447_s6 = scalar_lea.sflag [#allocation5], %s1446_s3 }
 0x63e   : > { %p1872_p13 = pnand %p3037_p6, %p3036_p3 }
 0x640   : > { %2306 = dma.done.wait (!%p1872_p13), %s1447_s6, 256  }
 0x641   : > { %2308 = vsyncadd (!%p1872_p13), %s1447_s6, 4294967040  ;;  %s31_s14 = sadd.s32 1, %s3035_s20   ;;  %s3038_s13 = sld [smem:[#allocation31_spill]] }
 0x642   : > { %p28_p11 = scmp.ge.s32.totalorder %s31_s14, 4   ;;  %s3039_s12 = sld [smem:[#allocation26_spill]] }
 0x643   : > { %s3040_s18 = sld [smem:[#allocation29_spill]]  ;;  %s3041_s30 = smov %s2315_s10 }
 0x644   : > { %s3042_s10 = smov %s2319_s11  ;;  %30 = sbr.rel (!%p28_p11) target bundleno = 17 (0x11), region = 149 }
 0x647   : > { %s3043_s11 = smov %s3038_s13 }
 0x649   : > { %s3044_s13 = smov %s3040_s18 }
 0x64b   :  { %1452 = vsyncpa [#allocation4], 1 }
 0x64c   :  { %1454 = vsyncpa [#allocation4 + $0x1], 1 }
 0x64d   :  { %1455 = vsyncpa [#allocation7], 1 }
 0x64e   :  { %1457 = vsyncpa [#allocation7 + $0x1], 1 }
 0x64f   :  { %1458 = vsyncpa [#allocation10], 1 }
 0x650   :  { %1459 = vsyncpa [#allocation13], 1 }
 0x651   :  { %1460 = vsyncpa [#allocation16], 1 }
 0x652   :  { %1461 = vsyncpa [#allocation5], 1 }
 0x653   :  { %1463 = vsyncpa [#allocation5 + $0x1], 1 }

</bundles_post_ra>
